<compile_context>
chip_gen: v5e
topology: v5e:2x2
jax: 0.10.0
libtpu: 0.0.40
codegen_flags: <defaults>
</compile_context>

<pallas_src>
import functools

import jax
import jax.numpy as jnp
from jax.experimental import pallas as pl
from jax.experimental.pallas import tpu as pltpu


# ---------------------------------------------------------------------------
# Shared math
# ---------------------------------------------------------------------------

def _layer_norm(x, gamma, beta, eps=1e-5):
    mu = jnp.mean(x, axis=-1, keepdims=True)
    var = jnp.mean((x - mu) ** 2, axis=-1, keepdims=True)
    return (x - mu) * jax.lax.rsqrt(var + eps) * gamma + beta


# ---------------------------------------------------------------------------
# Fused Pallas kernel: all layers + final norm in one pallas_call
# ---------------------------------------------------------------------------

def fused_encoder_kernel(
    x_ref,
    ln1_g_ref, ln1_b_ref,
    wq_ref, wk_ref, wv_ref,
    bq_ref, bk_ref, bv_ref,
    wo_ref, bo_ref,
    ln2_g_ref, ln2_b_ref,
    w1_ref, b1_ref,
    w2_ref, b2_ref,
    lnf_g_ref, lnf_b_ref,
    o_ref,
    *, num_heads, seq_len, activation, use_final_norm,
):
    """Grid = (batch_blocks, num_layers).

    Weights are L-stacked and already in x @ W convention; the q/k/v weights
    are pre-split per head ((H, D, dh)), the out-projection is pre-split as
    (H, dh, D), and the 1/sqrt(dh) query scale is folded into Wq / bq.

    o_ref doubles as the layer-resident activation buffer: its block index
    only depends on the (outer, "parallel") batch axis, so it stays in VMEM
    across the (inner, "arbitrary") layer axis and is written back to HBM
    exactly once per batch block.  Reordering the grid or marking the layer
    axis parallel would silently break this.
    """
    layer = pl.program_id(1)
    n_layers = pl.num_programs(1)

    @pl.when(layer == 0)
    def _init():
        o_ref[...] = x_ref[...]

    x2 = o_ref[...]                                  # (bb*T, D) float32
    rows, D = x2.shape
    T = seq_len
    bb = rows // T
    H = num_heads

    wdt = wq_ref.dtype                               # matmul operand dtype

    # --- self-attention block (pre-norm; dropout1 = identity) ---
    h_in = _layer_norm(x2, ln1_g_ref[0], ln1_b_ref[0])        # (bb*T, D) f32
    h_mm = h_in.astype(wdt)

    attn = jnp.zeros((rows, D), jnp.float32)
    for h in range(H):                               # unrolled; no lane slicing
        q = (jnp.dot(h_mm, wq_ref[0, h], preferred_element_type=jnp.float32)
             + bq_ref[0, h]).reshape(bb, T, -1)      # (bb, T, dh)
        k = (jnp.dot(h_mm, wk_ref[0, h], preferred_element_type=jnp.float32)
             + bk_ref[0, h]).reshape(bb, T, -1)
        v = (jnp.dot(h_mm, wv_ref[0, h], preferred_element_type=jnp.float32)
             + bv_ref[0, h]).reshape(bb, T, -1)

        s = jnp.einsum('bqd,bkd->bqk', q.astype(wdt), k.astype(wdt),
                       preferred_element_type=jnp.float32)    # (bb, T, T)
        s = s - jnp.max(s, axis=-1, keepdims=True)
        p = jnp.exp(s)
        p = p / jnp.sum(p, axis=-1, keepdims=True)            # exact softmax
        oh = jnp.einsum('bqk,bkd->bqd', p.astype(wdt), v.astype(wdt),
                        preferred_element_type=jnp.float32)   # (bb, T, dh)

        # out_proj applied per head: concat_h(o_h) @ Wo == sum_h o_h @ Wo[h]
        attn = attn + jnp.dot(oh.reshape(rows, -1).astype(wdt), wo_ref[0, h],
                              preferred_element_type=jnp.float32)
    attn = attn + bo_ref[0]
    x2 = x2 + attn                                   # residual

    # --- feed-forward block (pre-norm; dropout / dropout2 = identity) ---
    h2 = _layer_norm(x2, ln2_g_ref[0], ln2_b_ref[0])
    ff = jnp.dot(h2.astype(wdt), w1_ref[0],
                 preferred_element_type=jnp.float32) + b1_ref[0]
    if activation == "relu":
        ff = jnp.maximum(ff, 0.0)
    else:  # exact gelu, like torch.nn.functional.gelu default
        ff = jax.nn.gelu(ff, approximate=False)
    ff = jnp.dot(ff.astype(wdt), w2_ref[0],
                 preferred_element_type=jnp.float32) + b2_ref[0]
    x2 = x2 + ff                                     # residual

    o_ref[...] = x2

    @pl.when(layer == n_layers - 1)
    def _finalize():
        if use_final_norm:
            o_ref[...] = _layer_norm(x2, lnf_g_ref[...], lnf_b_ref[...])


# ---------------------------------------------------------------------------
# Wrapper: parameter prep (split heads / transpose / scale-fold / stack)
# ---------------------------------------------------------------------------

def _prep_layer_stack(layers_params, num_heads, weight_dtype):
    """Torch-convention per-layer params -> L-stacked, per-head-split arrays."""
    D = layers_params[0][2].shape[1]
    H = num_heads
    dh = D // H
    scale = 1.0 / (dh ** 0.5)
    fields = []
    for (ln1_g, ln1_b, w_in, b_in, w_out, b_out,
         ln2_g, ln2_b, w1, b1, w2, b2) in layers_params:
        w_in_t = w_in.T                                            # (D, 3D)
        wq = (w_in_t[:, 0 * D:1 * D] * scale).reshape(D, H, dh).transpose(1, 0, 2)
        wk = w_in_t[:, 1 * D:2 * D].reshape(D, H, dh).transpose(1, 0, 2)
        wv = w_in_t[:, 2 * D:3 * D].reshape(D, H, dh).transpose(1, 0, 2)
        bq = (b_in[0, 0 * D:1 * D] * scale).reshape(H, 1, dh)
        bk = b_in[0, 1 * D:2 * D].reshape(H, 1, dh)
        bv = b_in[0, 2 * D:3 * D].reshape(H, 1, dh)
        wo = w_out.T.reshape(H, dh, D)                             # (H, dh, D)
        fields.append((
            ln1_g, ln1_b,
            wq.astype(weight_dtype), wk.astype(weight_dtype), wv.astype(weight_dtype),
            bq, bk, bv,
            wo.astype(weight_dtype), b_out,
            ln2_g, ln2_b,
            w1.T.astype(weight_dtype), b1,
            w2.T.astype(weight_dtype), b2,
        ))
    return tuple(jnp.stack(f) for f in zip(*fields))


def transformer_encoder_forward(x_bct, layers_params, final_norm_params,
                                num_heads, activation, *,
                                batch_block=None,
                                weight_dtype=jnp.float32,
                                vmem_limit_bytes=None):
    """x_bct: (B, d_model, T) -> (B, d_model, T); matches the torch module."""
    x = jnp.transpose(x_bct, (0, 2, 1)).astype(jnp.float32)       # (B, T, D)
    B, T, D = x.shape
    L = len(layers_params)
    stacked = _prep_layer_stack(layers_params, num_heads, weight_dtype)

    # Single-TC chips (v5e/v6e): keep nb = 1 so the L-stacked weights stream
    # exactly once.  On v7x pass batch_block = B // 2 to shard the parallel
    # batch axis across both TensorCores (only when compute amortizes the
    # weight re-streaming).
    bb = B if batch_block is None else batch_block
    assert B % bb == 0
    nb = B // bb

    use_final = final_norm_params is not None
    if use_final:
        lnf_g, lnf_b = final_norm_params
    else:
        lnf_g = jnp.ones((1, D), jnp.float32)
        lnf_b = jnp.zeros((1, D), jnp.float32)

    x2d = x.reshape(B * T, D)                                     # 2-D I/O

    kern = functools.partial(
        fused_encoder_kernel, num_heads=num_heads, seq_len=T,
        activation=activation, use_final_norm=use_final)

    def _layer_spec(arr):
        nd = arr.ndim
        return pl.BlockSpec((1,) + arr.shape[1:],
                            lambda b, l, _n=nd: (l,) + (0,) * (_n - 1))

    def _const_spec(arr):
        nd = arr.ndim
        return pl.BlockSpec(arr.shape, lambda b, l, _n=nd: (0,) * _n)

    in_specs = ([pl.BlockSpec((bb * T, D), lambda b, l: (b, 0))]
                + [_layer_spec(p) for p in stacked]
                + [_const_spec(lnf_g), _const_spec(lnf_b)])

    if vmem_limit_bytes is None:
        # Rough budget: double-buffered per-layer weight blocks + activations,
        # generous padding factor; capped at 64 MiB so it is valid on v7x too.
        w_bytes = sum((p.size // p.shape[0]) * p.dtype.itemsize for p in stacked)
        act_bytes = 2 * B * T * max(D, 128) * 4
        vmem_limit_bytes = int(min(64 * 2**20,
                                   max(16 * 2**20, 6 * (2 * w_bytes + act_bytes))))

    out2d = pl.pallas_call(
        kern,
        out_shape=jax.ShapeDtypeStruct((B * T, D), jnp.float32),
        grid=(nb, L),
        in_specs=in_specs,
        out_specs=pl.BlockSpec((bb * T, D), lambda b, l: (b, 0)),
        compiler_params=pltpu.CompilerParams(
            # Layer axis MUST stay the innermost, "arbitrary" axis: the output
            # block doubles as the resident activation buffer.
            dimension_semantics=("parallel", "arbitrary"),
            vmem_limit_bytes=vmem_limit_bytes),
    )(x2d, *stacked, lnf_g, lnf_b)

    return jnp.transpose(out2d.reshape(B, T, D), (0, 2, 1))       # (B, D, T)


# ---------------------------------------------------------------------------
# Pure-JAX reference (torch-convention weights), for sanity checking
# ---------------------------------------------------------------------------

def _layer_ref(x, p, num_heads, activation):
    (ln1_g, ln1_b, w_in, b_in, w_out, b_out,
     ln2_g, ln2_b, w1, b1, w2, b2) = p
    B, T, D = x.shape
    dh = D // num_heads
    h = _layer_norm(x, ln1_g, ln1_b)
    qkv = jnp.einsum("btd,ed->bte", h, w_in) + b_in
    q, k, v = jnp.split(qkv, 3, axis=-1)
    q = q.reshape(B, T, num_heads, dh) * (1.0 / dh ** 0.5)
    k = k.reshape(B, T, num_heads, dh)
    v = v.reshape(B, T, num_heads, dh)
    s = jnp.einsum("bqhd,bkhd->bhqk", q, k)
    p_attn = jax.nn.softmax(s, axis=-1)
    attn = jnp.einsum("bhqk,bkhd->bqhd", p_attn, v).reshape(B, T, D)
    attn = jnp.einsum("btd,ed->bte", attn, w_out) + b_out
    x = x + attn
    h2 = _layer_norm(x, ln2_g, ln2_b)
    ff = jnp.einsum("btd,fd->btf", h2, w1) + b1
    ff = jnp.maximum(ff, 0.0) if activation == "relu" else jax.nn.gelu(ff, approximate=False)
    ff = jnp.einsum("btf,df->btd", ff, w2) + b2
    return x + ff


def reference_forward(x_bct, layers_params, final_norm_params,
                      num_heads, activation):
    x = jnp.transpose(x_bct, (0, 2, 1)).astype(jnp.float32)
    for lp in layers_params:
        x = _layer_ref(x, lp, num_heads, activation)
    if final_norm_params is not None:
        x = _layer_norm(x, *final_norm_params)
    return jnp.transpose(x, (0, 2, 1))


# ---------------------------------------------------------------------------
# main
# ---------------------------------------------------------------------------

if __name__ == "__main__":
    model_definition = dict(
        d_model=32, num_heads=4, dim_feedforward=64, dropout=0.1,
        activation="relu", normalize_before=True, num_layers=2,
        final_norm=True,
    )
    assert model_definition["normalize_before"], "only pre-norm is implemented"

    D = model_definition["d_model"]
    F = model_definition["dim_feedforward"]
    H = model_definition["num_heads"]
    L = model_definition["num_layers"]
    B, T = 2, 8

    key = jax.random.PRNGKey(0)
    ks = jax.random.split(key, 9)

    def rnd(k, shape, scale=0.05):
        return jax.random.normal(k, shape, dtype=jnp.float32) * scale

    # One layer's parameters (torch conventions); _get_clones deep-copies the
    # same layer, so all layers share identical values.
    layer_params = (
        jnp.ones((1, D), jnp.float32),            # ln1 gamma
        jnp.zeros((1, D), jnp.float32),           # ln1 beta
        rnd(ks[0], (3 * D, D)),                   # in_proj_weight (3D, D)
        rnd(ks[1], (1, 3 * D)),                   # in_proj_bias
        rnd(ks[2], (D, D)),                       # out_proj.weight
        rnd(ks[3], (1, D)),                       # out_proj.bias
        jnp.ones((1, D), jnp.float32),            # ln2 gamma
        jnp.zeros((1, D), jnp.float32),           # ln2 beta
        rnd(ks[4], (F, D)),                       # linear1.weight (F, D)
        rnd(ks[5], (1, F)),                       # linear1.bias
        rnd(ks[6], (D, F)),                       # linear2.weight (D, F)
        rnd(ks[7], (1, D)),                       # linear2.bias
    )
    layers_params = [layer_params] * L
    final_norm_params = (jnp.ones((1, D), jnp.float32),
                         jnp.zeros((1, D), jnp.float32))

    x = jax.random.normal(ks[8], (B, D, T), dtype=jnp.float32)

    out = transformer_encoder_forward(
        x, layers_params, final_norm_params, H,
        model_definition["activation"])
    out = jax.block_until_ready(out)

    ref = reference_forward(
        x, layers_params, final_norm_params, H,
        model_definition["activation"])
    ref = jax.block_until_ready(ref)

    assert out.shape == (B, D, T), out.shape
    assert jnp.allclose(out, ref, atol=1e-4, rtol=1e-4), \
        float(jnp.max(jnp.abs(out - ref)))

    print("KERNEL_OK")
</pallas_src>

<mosaic_0001>
module attributes {stable_mosaic.version = 11 : i64} {
  func.func @fused_encoder_kernel(%arg0: i32, %arg1: i32, %arg2: memref<16x32xf32, #tpu.memory_space<vmem>>, %arg3: memref<1x1x32xf32, #tpu.memory_space<vmem>>, %arg4: memref<1x1x32xf32, #tpu.memory_space<vmem>>, %arg5: memref<1x4x32x8xf32, #tpu.memory_space<vmem>>, %arg6: memref<1x4x32x8xf32, #tpu.memory_space<vmem>>, %arg7: memref<1x4x32x8xf32, #tpu.memory_space<vmem>>, %arg8: memref<1x4x1x8xf32, #tpu.memory_space<vmem>>, %arg9: memref<1x4x1x8xf32, #tpu.memory_space<vmem>>, %arg10: memref<1x4x1x8xf32, #tpu.memory_space<vmem>>, %arg11: memref<1x4x8x32xf32, #tpu.memory_space<vmem>>, %arg12: memref<1x1x32xf32, #tpu.memory_space<vmem>>, %arg13: memref<1x1x32xf32, #tpu.memory_space<vmem>>, %arg14: memref<1x1x32xf32, #tpu.memory_space<vmem>>, %arg15: memref<1x32x64xf32, #tpu.memory_space<vmem>>, %arg16: memref<1x1x64xf32, #tpu.memory_space<vmem>>, %arg17: memref<1x64x32xf32, #tpu.memory_space<vmem>>, %arg18: memref<1x1x32xf32, #tpu.memory_space<vmem>>, %arg19: memref<1x32xf32, #tpu.memory_space<vmem>>, %arg20: memref<1x32xf32, #tpu.memory_space<vmem>>, %arg21: memref<16x32xf32, #tpu.memory_space<vmem>>) attributes {dimension_semantics = [#tpu.dimension_semantics<parallel>, #tpu.dimension_semantics<arbitrary>], iteration_bounds = array<i64: 1, 2>, scalar_prefetch = 0 : i64, scratch_operands = 0 : i64, tpu.core_type = #tpu.core_type<tc>, window_params = [{transform_indices = @transform_0, window_bounds = array<i64: 16, 32>}, {transform_indices = @transform_1, window_bounds = array<i64: 1, 1, 32>}, {transform_indices = @transform_2, window_bounds = array<i64: 1, 1, 32>}, {transform_indices = @transform_3, window_bounds = array<i64: 1, 4, 32, 8>}, {transform_indices = @transform_4, window_bounds = array<i64: 1, 4, 32, 8>}, {transform_indices = @transform_5, window_bounds = array<i64: 1, 4, 32, 8>}, {transform_indices = @transform_6, window_bounds = array<i64: 1, 4, 1, 8>}, {transform_indices = @transform_7, window_bounds = array<i64: 1, 4, 1, 8>}, {transform_indices = @transform_8, window_bounds = array<i64: 1, 4, 1, 8>}, {transform_indices = @transform_9, window_bounds = array<i64: 1, 4, 8, 32>}, {transform_indices = @transform_10, window_bounds = array<i64: 1, 1, 32>}, {transform_indices = @transform_11, window_bounds = array<i64: 1, 1, 32>}, {transform_indices = @transform_12, window_bounds = array<i64: 1, 1, 32>}, {transform_indices = @transform_13, window_bounds = array<i64: 1, 32, 64>}, {transform_indices = @transform_14, window_bounds = array<i64: 1, 1, 64>}, {transform_indices = @transform_15, window_bounds = array<i64: 1, 64, 32>}, {transform_indices = @transform_16, window_bounds = array<i64: 1, 1, 32>}, {pipeline_mode = #tpu.pipeline_mode<synchronous>, transform_indices = @transform_17, window_bounds = array<i64: 1, 32>}, {pipeline_mode = #tpu.pipeline_mode<synchronous>, transform_indices = @transform_18, window_bounds = array<i64: 1, 32>}, {transform_indices = @transform_19, window_bounds = array<i64: 16, 32>}]} {
    %c0_i32 = arith.constant 0 : i32
    %0 = arith.cmpi eq, %arg1, %c0_i32 : i32
    %1 = arith.extui %0 : i1 to i32
    %c0_i32_0 = arith.constant 0 : i32
    %2 = arith.cmpi ne, %1, %c0_i32_0 : i32
    scf.if %2 {
      %c0_186 = arith.constant 0 : index
      %c0_187 = arith.constant 0 : index
      %243 = vector.load %arg2[%c0_186, %c0_187] : memref<16x32xf32, #tpu.memory_space<vmem>>, vector<16x32xf32>
      %c0_188 = arith.constant 0 : index
      %c0_189 = arith.constant 0 : index
      %244 = vector.load %arg21[%c0_188, %c0_189] : memref<16x32xf32, #tpu.memory_space<vmem>>, vector<16x32xf32>
      tpu.vector_store %arg21[%c0_188, %c0_189], %243 {strides = array<i32>} : memref<16x32xf32, #tpu.memory_space<vmem>>, vector<16x32xf32>,
    } else {
    }
    %c0 = arith.constant 0 : index
    %c0_1 = arith.constant 0 : index
    %3 = vector.load %arg21[%c0, %c0_1] : memref<16x32xf32, #tpu.memory_space<vmem>>, vector<16x32xf32>
    %c0_2 = arith.constant 0 : index
    %c0_3 = arith.constant 0 : index
    %c0_4 = arith.constant 0 : index
    %4 = vector.load %arg3[%c0_2, %c0_3, %c0_4] : memref<1x1x32xf32, #tpu.memory_space<vmem>>, vector<1x1x32xf32>
    %5 = vector.shape_cast %4 : vector<1x1x32xf32> to vector<1x32xf32>
    %c0_5 = arith.constant 0 : index
    %c0_6 = arith.constant 0 : index
    %c0_7 = arith.constant 0 : index
    %6 = vector.load %arg4[%c0_5, %c0_6, %c0_7] : memref<1x1x32xf32, #tpu.memory_space<vmem>>, vector<1x1x32xf32>
    %7 = vector.shape_cast %6 : vector<1x1x32xf32> to vector<1x32xf32>
    %cst = arith.constant dense<0.000000e+00> : vector<16xf32>
    %8 = vector.multi_reduction <add>, %3, %cst [1] : vector<16x32xf32> to vector<16xf32>
    %9 = vector.shape_cast %8 : vector<16xf32> to vector<16x1xf32>
    %cst_8 = arith.constant 3.200000e+01 : f32
    %10 = vector.broadcast %cst_8 : f32 to vector<16x1xf32>
    %11 = arith.divf %9, %10 : vector<16x1xf32>
    %12 = vector.broadcast %11 : vector<16x1xf32> to vector<16x32xf32>
    %13 = arith.subf %3, %12 : vector<16x32xf32>
    %14 = arith.mulf %13, %13 : vector<16x32xf32>
    %cst_9 = arith.constant dense<0.000000e+00> : vector<16xf32>
    %15 = vector.multi_reduction <add>, %14, %cst_9 [1] : vector<16x32xf32> to vector<16xf32>
    %16 = vector.shape_cast %15 : vector<16xf32> to vector<16x1xf32>
    %cst_10 = arith.constant 3.200000e+01 : f32
    %17 = vector.broadcast %cst_10 : f32 to vector<16x1xf32>
    %18 = arith.divf %16, %17 : vector<16x1xf32>
    %19 = vector.broadcast %11 : vector<16x1xf32> to vector<16x32xf32>
    %20 = arith.subf %3, %19 : vector<16x32xf32>
    %cst_11 = arith.constant 9.99999974E-6 : f32
    %21 = vector.broadcast %cst_11 : f32 to vector<16x1xf32>
    %22 = arith.addf %18, %21 : vector<16x1xf32>
    %23 = math.rsqrt %22 : vector<16x1xf32>
    %24 = vector.broadcast %23 : vector<16x1xf32> to vector<16x32xf32>
    %25 = arith.mulf %20, %24 : vector<16x32xf32>
    %26 = vector.broadcast %5 : vector<1x32xf32> to vector<16x32xf32>
    %27 = arith.mulf %25, %26 : vector<16x32xf32>
    %28 = vector.broadcast %7 : vector<1x32xf32> to vector<16x32xf32>
    %29 = arith.addf %27, %28 : vector<16x32xf32>
    %cst_12 = arith.constant 0.000000e+00 : f32
    %30 = vector.broadcast %cst_12 : f32 to vector<16x32xf32>
    %c0_13 = arith.constant 0 : index
    %c0_14 = arith.constant 0 : index
    %c0_15 = arith.constant 0 : index
    %c0_16 = arith.constant 0 : index
    %31 = vector.load %arg5[%c0_13, %c0_14, %c0_15, %c0_16] : memref<1x4x32x8xf32, #tpu.memory_space<vmem>>, vector<1x1x32x8xf32>
    %32 = vector.shape_cast %31 : vector<1x1x32x8xf32> to vector<32x8xf32>
    %cst_17 = arith.constant dense<0.000000e+00> : vector<16x8xf32>
    %33 = tpu.matmul %29, %32, %cst_17 {dimension_numbers = #tpu.dot_dimension_numbers<[1], [0], [0], [1], [0, 0, 1, 1], [], []>} : vector<16x32xf32>, vector<32x8xf32>, vector<16x8xf32> -> vector<16x8xf32>
    %c0_18 = arith.constant 0 : index
    %c0_19 = arith.constant 0 : index
    %c0_20 = arith.constant 0 : index
    %c0_21 = arith.constant 0 : index
    %34 = vector.load %arg8[%c0_18, %c0_19, %c0_20, %c0_21] : memref<1x4x1x8xf32, #tpu.memory_space<vmem>>, vector<1x1x1x8xf32>
    %35 = vector.shape_cast %34 : vector<1x1x1x8xf32> to vector<1x8xf32>
    %36 = vector.broadcast %35 : vector<1x8xf32> to vector<16x8xf32>
    %37 = arith.addf %33, %36 : vector<16x8xf32>
    %38 = vector.shape_cast %37 : vector<16x8xf32> to vector<2x8x8xf32>
    %c0_22 = arith.constant 0 : index
    %c0_23 = arith.constant 0 : index
    %c0_24 = arith.constant 0 : index
    %c0_25 = arith.constant 0 : index
    %39 = vector.load %arg6[%c0_22, %c0_23, %c0_24, %c0_25] : memref<1x4x32x8xf32, #tpu.memory_space<vmem>>, vector<1x1x32x8xf32>
    %40 = vector.shape_cast %39 : vector<1x1x32x8xf32> to vector<32x8xf32>
    %cst_26 = arith.constant dense<0.000000e+00> : vector<16x8xf32>
    %41 = tpu.matmul %29, %40, %cst_26 {dimension_numbers = #tpu.dot_dimension_numbers<[1], [0], [0], [1], [0, 0, 1, 1], [], []>} : vector<16x32xf32>, vector<32x8xf32>, vector<16x8xf32> -> vector<16x8xf32>
    %c0_27 = arith.constant 0 : index
    %c0_28 = arith.constant 0 : index
    %c0_29 = arith.constant 0 : index
    %c0_30 = arith.constant 0 : index
    %42 = vector.load %arg9[%c0_27, %c0_28, %c0_29, %c0_30] : memref<1x4x1x8xf32, #tpu.memory_space<vmem>>, vector<1x1x1x8xf32>
    %43 = vector.shape_cast %42 : vector<1x1x1x8xf32> to vector<1x8xf32>
    %44 = vector.broadcast %43 : vector<1x8xf32> to vector<16x8xf32>
    %45 = arith.addf %41, %44 : vector<16x8xf32>
    %46 = vector.shape_cast %45 : vector<16x8xf32> to vector<2x8x8xf32>
    %c0_31 = arith.constant 0 : index
    %c0_32 = arith.constant 0 : index
    %c0_33 = arith.constant 0 : index
    %c0_34 = arith.constant 0 : index
    %47 = vector.load %arg7[%c0_31, %c0_32, %c0_33, %c0_34] : memref<1x4x32x8xf32, #tpu.memory_space<vmem>>, vector<1x1x32x8xf32>
    %48 = vector.shape_cast %47 : vector<1x1x32x8xf32> to vector<32x8xf32>
    %cst_35 = arith.constant dense<0.000000e+00> : vector<16x8xf32>
    %49 = tpu.matmul %29, %48, %cst_35 {dimension_numbers = #tpu.dot_dimension_numbers<[1], [0], [0], [1], [0, 0, 1, 1], [], []>} : vector<16x32xf32>, vector<32x8xf32>, vector<16x8xf32> -> vector<16x8xf32>
    %c0_36 = arith.constant 0 : index
    %c0_37 = arith.constant 0 : index
    %c0_38 = arith.constant 0 : index
    %c0_39 = arith.constant 0 : index
    %50 = vector.load %arg10[%c0_36, %c0_37, %c0_38, %c0_39] : memref<1x4x1x8xf32, #tpu.memory_space<vmem>>, vector<1x1x1x8xf32>
    %51 = vector.shape_cast %50 : vector<1x1x1x8xf32> to vector<1x8xf32>
    %52 = vector.broadcast %51 : vector<1x8xf32> to vector<16x8xf32>
    %53 = arith.addf %49, %52 : vector<16x8xf32>
    %54 = vector.shape_cast %53 : vector<16x8xf32> to vector<2x8x8xf32>
    "tpu.trace_start"() <{level = 10 : i32, message = "bqd,bkd->bqk"}> : () -> ()
    %cst_40 = arith.constant dense<0.000000e+00> : vector<2x8x8xf32>
    %55 = tpu.matmul %38, %46, %cst_40 {dimension_numbers = #tpu.dot_dimension_numbers<[2], [2], [1], [1], [0, 0, 0, 1, 1, 1], [0], [0]>} : vector<2x8x8xf32>, vector<2x8x8xf32>, vector<2x8x8xf32> -> vector<2x8x8xf32>
    "tpu.trace_stop"() : () -> ()
    %cst_41 = arith.constant dense<0xFF800000> : vector<2x8xf32>
    %56 = vector.multi_reduction <maximumf>, %55, %cst_41 [2] : vector<2x8x8xf32> to vector<2x8xf32>
    %57 = vector.shape_cast %56 : vector<2x8xf32> to vector<2x8x1xf32>
    %58 = vector.broadcast %57 : vector<2x8x1xf32> to vector<2x8x8xf32>
    %59 = arith.subf %55, %58 : vector<2x8x8xf32>
    %60 = math.exp %59 : vector<2x8x8xf32>
    %cst_42 = arith.constant dense<0.000000e+00> : vector<2x8xf32>
    %61 = vector.multi_reduction <add>, %60, %cst_42 [2] : vector<2x8x8xf32> to vector<2x8xf32>
    %62 = vector.shape_cast %61 : vector<2x8xf32> to vector<2x8x1xf32>
    %63 = vector.broadcast %62 : vector<2x8x1xf32> to vector<2x8x8xf32>
    %64 = arith.divf %60, %63 : vector<2x8x8xf32>
    "tpu.trace_start"() <{level = 10 : i32, message = "bqk,bkd->bqd"}> : () -> ()
    %cst_43 = arith.constant dense<0.000000e+00> : vector<2x8x8xf32>
    %65 = tpu.matmul %64, %54, %cst_43 {dimension_numbers = #tpu.dot_dimension_numbers<[2], [1], [1], [2], [0, 0, 0, 1, 1, 2], [0], [0]>} : vector<2x8x8xf32>, vector<2x8x8xf32>, vector<2x8x8xf32> -> vector<2x8x8xf32>
    "tpu.trace_stop"() : () -> ()
    %66 = vector.shape_cast %65 : vector<2x8x8xf32> to vector<16x8xf32>
    %c0_44 = arith.constant 0 : index
    %c0_45 = arith.constant 0 : index
    %c0_46 = arith.constant 0 : index
    %c0_47 = arith.constant 0 : index
    %67 = vector.load %arg11[%c0_44, %c0_45, %c0_46, %c0_47] : memref<1x4x8x32xf32, #tpu.memory_space<vmem>>, vector<1x1x8x32xf32>
    %68 = vector.shape_cast %67 : vector<1x1x8x32xf32> to vector<8x32xf32>
    %cst_48 = arith.constant dense<0.000000e+00> : vector<16x32xf32>
    %69 = tpu.matmul %66, %68, %cst_48 {dimension_numbers = #tpu.dot_dimension_numbers<[1], [0], [0], [1], [0, 0, 1, 1], [], []>} : vector<16x8xf32>, vector<8x32xf32>, vector<16x32xf32> -> vector<16x32xf32>
    %70 = arith.addf %30, %69 : vector<16x32xf32>
    %c0_49 = arith.constant 0 : index
    %c1 = arith.constant 1 : index
    %c0_50 = arith.constant 0 : index
    %c0_51 = arith.constant 0 : index
    %71 = vector.load %arg5[%c0_49, %c1, %c0_50, %c0_51] : memref<1x4x32x8xf32, #tpu.memory_space<vmem>>, vector<1x1x32x8xf32>
    %72 = vector.shape_cast %71 : vector<1x1x32x8xf32> to vector<32x8xf32>
    %cst_52 = arith.constant dense<0.000000e+00> : vector<16x8xf32>
    %73 = tpu.matmul %29, %72, %cst_52 {dimension_numbers = #tpu.dot_dimension_numbers<[1], [0], [0], [1], [0, 0, 1, 1], [], []>} : vector<16x32xf32>, vector<32x8xf32>, vector<16x8xf32> -> vector<16x8xf32>
    %c0_53 = arith.constant 0 : index
    %c1_54 = arith.constant 1 : index
    %c0_55 = arith.constant 0 : index
    %c0_56 = arith.constant 0 : index
    %74 = vector.load %arg8[%c0_53, %c1_54, %c0_55, %c0_56] : memref<1x4x1x8xf32, #tpu.memory_space<vmem>>, vector<1x1x1x8xf32>
    %75 = vector.shape_cast %74 : vector<1x1x1x8xf32> to vector<1x8xf32>
    %76 = vector.broadcast %75 : vector<1x8xf32> to vector<16x8xf32>
    %77 = arith.addf %73, %76 : vector<16x8xf32>
    %78 = vector.shape_cast %77 : vector<16x8xf32> to vector<2x8x8xf32>
    %c0_57 = arith.constant 0 : index
    %c1_58 = arith.constant 1 : index
    %c0_59 = arith.constant 0 : index
    %c0_60 = arith.constant 0 : index
    %79 = vector.load %arg6[%c0_57, %c1_58, %c0_59, %c0_60] : memref<1x4x32x8xf32, #tpu.memory_space<vmem>>, vector<1x1x32x8xf32>
    %80 = vector.shape_cast %79 : vector<1x1x32x8xf32> to vector<32x8xf32>
    %cst_61 = arith.constant dense<0.000000e+00> : vector<16x8xf32>
    %81 = tpu.matmul %29, %80, %cst_61 {dimension_numbers = #tpu.dot_dimension_numbers<[1], [0], [0], [1], [0, 0, 1, 1], [], []>} : vector<16x32xf32>, vector<32x8xf32>, vector<16x8xf32> -> vector<16x8xf32>
    %c0_62 = arith.constant 0 : index
    %c1_63 = arith.constant 1 : index
    %c0_64 = arith.constant 0 : index
    %c0_65 = arith.constant 0 : index
    %82 = vector.load %arg9[%c0_62, %c1_63, %c0_64, %c0_65] : memref<1x4x1x8xf32, #tpu.memory_space<vmem>>, vector<1x1x1x8xf32>
    %83 = vector.shape_cast %82 : vector<1x1x1x8xf32> to vector<1x8xf32>
    %84 = vector.broadcast %83 : vector<1x8xf32> to vector<16x8xf32>
    %85 = arith.addf %81, %84 : vector<16x8xf32>
    %86 = vector.shape_cast %85 : vector<16x8xf32> to vector<2x8x8xf32>
    %c0_66 = arith.constant 0 : index
    %c1_67 = arith.constant 1 : index
    %c0_68 = arith.constant 0 : index
    %c0_69 = arith.constant 0 : index
    %87 = vector.load %arg7[%c0_66, %c1_67, %c0_68, %c0_69] : memref<1x4x32x8xf32, #tpu.memory_space<vmem>>, vector<1x1x32x8xf32>
    %88 = vector.shape_cast %87 : vector<1x1x32x8xf32> to vector<32x8xf32>
    %cst_70 = arith.constant dense<0.000000e+00> : vector<16x8xf32>
    %89 = tpu.matmul %29, %88, %cst_70 {dimension_numbers = #tpu.dot_dimension_numbers<[1], [0], [0], [1], [0, 0, 1, 1], [], []>} : vector<16x32xf32>, vector<32x8xf32>, vector<16x8xf32> -> vector<16x8xf32>
    %c0_71 = arith.constant 0 : index
    %c1_72 = arith.constant 1 : index
    %c0_73 = arith.constant 0 : index
    %c0_74 = arith.constant 0 : index
    %90 = vector.load %arg10[%c0_71, %c1_72, %c0_73, %c0_74] : memref<1x4x1x8xf32, #tpu.memory_space<vmem>>, vector<1x1x1x8xf32>
    %91 = vector.shape_cast %90 : vector<1x1x1x8xf32> to vector<1x8xf32>
    %92 = vector.broadcast %91 : vector<1x8xf32> to vector<16x8xf32>
    %93 = arith.addf %89, %92 : vector<16x8xf32>
    %94 = vector.shape_cast %93 : vector<16x8xf32> to vector<2x8x8xf32>
    "tpu.trace_start"() <{level = 10 : i32, message = "bqd,bkd->bqk"}> : () -> ()
    %cst_75 = arith.constant dense<0.000000e+00> : vector<2x8x8xf32>
    %95 = tpu.matmul %78, %86, %cst_75 {dimension_numbers = #tpu.dot_dimension_numbers<[2], [2], [1], [1], [0, 0, 0, 1, 1, 1], [0], [0]>} : vector<2x8x8xf32>, vector<2x8x8xf32>, vector<2x8x8xf32> -> vector<2x8x8xf32>
    "tpu.trace_stop"() : () -> ()
    %cst_76 = arith.constant dense<0xFF800000> : vector<2x8xf32>
    %96 = vector.multi_reduction <maximumf>, %95, %cst_76 [2] : vector<2x8x8xf32> to vector<2x8xf32>
    %97 = vector.shape_cast %96 : vector<2x8xf32> to vector<2x8x1xf32>
    %98 = vector.broadcast %97 : vector<2x8x1xf32> to vector<2x8x8xf32>
    %99 = arith.subf %95, %98 : vector<2x8x8xf32>
    %100 = math.exp %99 : vector<2x8x8xf32>
    %cst_77 = arith.constant dense<0.000000e+00> : vector<2x8xf32>
    %101 = vector.multi_reduction <add>, %100, %cst_77 [2] : vector<2x8x8xf32> to vector<2x8xf32>
    %102 = vector.shape_cast %101 : vector<2x8xf32> to vector<2x8x1xf32>
    %103 = vector.broadcast %102 : vector<2x8x1xf32> to vector<2x8x8xf32>
    %104 = arith.divf %100, %103 : vector<2x8x8xf32>
    "tpu.trace_start"() <{level = 10 : i32, message = "bqk,bkd->bqd"}> : () -> ()
    %cst_78 = arith.constant dense<0.000000e+00> : vector<2x8x8xf32>
    %105 = tpu.matmul %104, %94, %cst_78 {dimension_numbers = #tpu.dot_dimension_numbers<[2], [1], [1], [2], [0, 0, 0, 1, 1, 2], [0], [0]>} : vector<2x8x8xf32>, vector<2x8x8xf32>, vector<2x8x8xf32> -> vector<2x8x8xf32>
    "tpu.trace_stop"() : () -> ()
    %106 = vector.shape_cast %105 : vector<2x8x8xf32> to vector<16x8xf32>
    %c0_79 = arith.constant 0 : index
    %c1_80 = arith.constant 1 : index
    %c0_81 = arith.constant 0 : index
    %c0_82 = arith.constant 0 : index
    %107 = vector.load %arg11[%c0_79, %c1_80, %c0_81, %c0_82] : memref<1x4x8x32xf32, #tpu.memory_space<vmem>>, vector<1x1x8x32xf32>
    %108 = vector.shape_cast %107 : vector<1x1x8x32xf32> to vector<8x32xf32>
    %cst_83 = arith.constant dense<0.000000e+00> : vector<16x32xf32>
    %109 = tpu.matmul %106, %108, %cst_83 {dimension_numbers = #tpu.dot_dimension_numbers<[1], [0], [0], [1], [0, 0, 1, 1], [], []>} : vector<16x8xf32>, vector<8x32xf32>, vector<16x32xf32> -> vector<16x32xf32>
    %110 = arith.addf %70, %109 : vector<16x32xf32>
    %c0_84 = arith.constant 0 : index
    %c2 = arith.constant 2 : index
    %c0_85 = arith.constant 0 : index
    %c0_86 = arith.constant 0 : index
    %111 = vector.load %arg5[%c0_84, %c2, %c0_85, %c0_86] : memref<1x4x32x8xf32, #tpu.memory_space<vmem>>, vector<1x1x32x8xf32>
    %112 = vector.shape_cast %111 : vector<1x1x32x8xf32> to vector<32x8xf32>
    %cst_87 = arith.constant dense<0.000000e+00> : vector<16x8xf32>
    %113 = tpu.matmul %29, %112, %cst_87 {dimension_numbers = #tpu.dot_dimension_numbers<[1], [0], [0], [1], [0, 0, 1, 1], [], []>} : vector<16x32xf32>, vector<32x8xf32>, vector<16x8xf32> -> vector<16x8xf32>
    %c0_88 = arith.constant 0 : index
    %c2_89 = arith.constant 2 : index
    %c0_90 = arith.constant 0 : index
    %c0_91 = arith.constant 0 : index
    %114 = vector.load %arg8[%c0_88, %c2_89, %c0_90, %c0_91] : memref<1x4x1x8xf32, #tpu.memory_space<vmem>>, vector<1x1x1x8xf32>
    %115 = vector.shape_cast %114 : vector<1x1x1x8xf32> to vector<1x8xf32>
    %116 = vector.broadcast %115 : vector<1x8xf32> to vector<16x8xf32>
    %117 = arith.addf %113, %116 : vector<16x8xf32>
    %118 = vector.shape_cast %117 : vector<16x8xf32> to vector<2x8x8xf32>
    %c0_92 = arith.constant 0 : index
    %c2_93 = arith.constant 2 : index
    %c0_94 = arith.constant 0 : index
    %c0_95 = arith.constant 0 : index
    %119 = vector.load %arg6[%c0_92, %c2_93, %c0_94, %c0_95] : memref<1x4x32x8xf32, #tpu.memory_space<vmem>>, vector<1x1x32x8xf32>
    %120 = vector.shape_cast %119 : vector<1x1x32x8xf32> to vector<32x8xf32>
    %cst_96 = arith.constant dense<0.000000e+00> : vector<16x8xf32>
    %121 = tpu.matmul %29, %120, %cst_96 {dimension_numbers = #tpu.dot_dimension_numbers<[1], [0], [0], [1], [0, 0, 1, 1], [], []>} : vector<16x32xf32>, vector<32x8xf32>, vector<16x8xf32> -> vector<16x8xf32>
    %c0_97 = arith.constant 0 : index
    %c2_98 = arith.constant 2 : index
    %c0_99 = arith.constant 0 : index
    %c0_100 = arith.constant 0 : index
    %122 = vector.load %arg9[%c0_97, %c2_98, %c0_99, %c0_100] : memref<1x4x1x8xf32, #tpu.memory_space<vmem>>, vector<1x1x1x8xf32>
    %123 = vector.shape_cast %122 : vector<1x1x1x8xf32> to vector<1x8xf32>
    %124 = vector.broadcast %123 : vector<1x8xf32> to vector<16x8xf32>
    %125 = arith.addf %121, %124 : vector<16x8xf32>
    %126 = vector.shape_cast %125 : vector<16x8xf32> to vector<2x8x8xf32>
    %c0_101 = arith.constant 0 : index
    %c2_102 = arith.constant 2 : index
    %c0_103 = arith.constant 0 : index
    %c0_104 = arith.constant 0 : index
    %127 = vector.load %arg7[%c0_101, %c2_102, %c0_103, %c0_104] : memref<1x4x32x8xf32, #tpu.memory_space<vmem>>, vector<1x1x32x8xf32>
    %128 = vector.shape_cast %127 : vector<1x1x32x8xf32> to vector<32x8xf32>
    %cst_105 = arith.constant dense<0.000000e+00> : vector<16x8xf32>
    %129 = tpu.matmul %29, %128, %cst_105 {dimension_numbers = #tpu.dot_dimension_numbers<[1], [0], [0], [1], [0, 0, 1, 1], [], []>} : vector<16x32xf32>, vector<32x8xf32>, vector<16x8xf32> -> vector<16x8xf32>
    %c0_106 = arith.constant 0 : index
    %c2_107 = arith.constant 2 : index
    %c0_108 = arith.constant 0 : index
    %c0_109 = arith.constant 0 : index
    %130 = vector.load %arg10[%c0_106, %c2_107, %c0_108, %c0_109] : memref<1x4x1x8xf32, #tpu.memory_space<vmem>>, vector<1x1x1x8xf32>
    %131 = vector.shape_cast %130 : vector<1x1x1x8xf32> to vector<1x8xf32>
    %132 = vector.broadcast %131 : vector<1x8xf32> to vector<16x8xf32>
    %133 = arith.addf %129, %132 : vector<16x8xf32>
    %134 = vector.shape_cast %133 : vector<16x8xf32> to vector<2x8x8xf32>
    "tpu.trace_start"() <{level = 10 : i32, message = "bqd,bkd->bqk"}> : () -> ()
    %cst_110 = arith.constant dense<0.000000e+00> : vector<2x8x8xf32>
    %135 = tpu.matmul %118, %126, %cst_110 {dimension_numbers = #tpu.dot_dimension_numbers<[2], [2], [1], [1], [0, 0, 0, 1, 1, 1], [0], [0]>} : vector<2x8x8xf32>, vector<2x8x8xf32>, vector<2x8x8xf32> -> vector<2x8x8xf32>
    "tpu.trace_stop"() : () -> ()
    %cst_111 = arith.constant dense<0xFF800000> : vector<2x8xf32>
    %136 = vector.multi_reduction <maximumf>, %135, %cst_111 [2] : vector<2x8x8xf32> to vector<2x8xf32>
    %137 = vector.shape_cast %136 : vector<2x8xf32> to vector<2x8x1xf32>
    %138 = vector.broadcast %137 : vector<2x8x1xf32> to vector<2x8x8xf32>
    %139 = arith.subf %135, %138 : vector<2x8x8xf32>
    %140 = math.exp %139 : vector<2x8x8xf32>
    %cst_112 = arith.constant dense<0.000000e+00> : vector<2x8xf32>
    %141 = vector.multi_reduction <add>, %140, %cst_112 [2] : vector<2x8x8xf32> to vector<2x8xf32>
    %142 = vector.shape_cast %141 : vector<2x8xf32> to vector<2x8x1xf32>
    %143 = vector.broadcast %142 : vector<2x8x1xf32> to vector<2x8x8xf32>
    %144 = arith.divf %140, %143 : vector<2x8x8xf32>
    "tpu.trace_start"() <{level = 10 : i32, message = "bqk,bkd->bqd"}> : () -> ()
    %cst_113 = arith.constant dense<0.000000e+00> : vector<2x8x8xf32>
    %145 = tpu.matmul %144, %134, %cst_113 {dimension_numbers = #tpu.dot_dimension_numbers<[2], [1], [1], [2], [0, 0, 0, 1, 1, 2], [0], [0]>} : vector<2x8x8xf32>, vector<2x8x8xf32>, vector<2x8x8xf32> -> vector<2x8x8xf32>
    "tpu.trace_stop"() : () -> ()
    %146 = vector.shape_cast %145 : vector<2x8x8xf32> to vector<16x8xf32>
    %c0_114 = arith.constant 0 : index
    %c2_115 = arith.constant 2 : index
    %c0_116 = arith.constant 0 : index
    %c0_117 = arith.constant 0 : index
    %147 = vector.load %arg11[%c0_114, %c2_115, %c0_116, %c0_117] : memref<1x4x8x32xf32, #tpu.memory_space<vmem>>, vector<1x1x8x32xf32>
    %148 = vector.shape_cast %147 : vector<1x1x8x32xf32> to vector<8x32xf32>
    %cst_118 = arith.constant dense<0.000000e+00> : vector<16x32xf32>
    %149 = tpu.matmul %146, %148, %cst_118 {dimension_numbers = #tpu.dot_dimension_numbers<[1], [0], [0], [1], [0, 0, 1, 1], [], []>} : vector<16x8xf32>, vector<8x32xf32>, vector<16x32xf32> -> vector<16x32xf32>
    %150 = arith.addf %110, %149 : vector<16x32xf32>
    %c0_119 = arith.constant 0 : index
    %c3 = arith.constant 3 : index
    %c0_120 = arith.constant 0 : index
    %c0_121 = arith.constant 0 : index
    %151 = vector.load %arg5[%c0_119, %c3, %c0_120, %c0_121] : memref<1x4x32x8xf32, #tpu.memory_space<vmem>>, vector<1x1x32x8xf32>
    %152 = vector.shape_cast %151 : vector<1x1x32x8xf32> to vector<32x8xf32>
    %cst_122 = arith.constant dense<0.000000e+00> : vector<16x8xf32>
    %153 = tpu.matmul %29, %152, %cst_122 {dimension_numbers = #tpu.dot_dimension_numbers<[1], [0], [0], [1], [0, 0, 1, 1], [], []>} : vector<16x32xf32>, vector<32x8xf32>, vector<16x8xf32> -> vector<16x8xf32>
    %c0_123 = arith.constant 0 : index
    %c3_124 = arith.constant 3 : index
    %c0_125 = arith.constant 0 : index
    %c0_126 = arith.constant 0 : index
    %154 = vector.load %arg8[%c0_123, %c3_124, %c0_125, %c0_126] : memref<1x4x1x8xf32, #tpu.memory_space<vmem>>, vector<1x1x1x8xf32>
    %155 = vector.shape_cast %154 : vector<1x1x1x8xf32> to vector<1x8xf32>
    %156 = vector.broadcast %155 : vector<1x8xf32> to vector<16x8xf32>
    %157 = arith.addf %153, %156 : vector<16x8xf32>
    %158 = vector.shape_cast %157 : vector<16x8xf32> to vector<2x8x8xf32>
    %c0_127 = arith.constant 0 : index
    %c3_128 = arith.constant 3 : index
    %c0_129 = arith.constant 0 : index
    %c0_130 = arith.constant 0 : index
    %159 = vector.load %arg6[%c0_127, %c3_128, %c0_129, %c0_130] : memref<1x4x32x8xf32, #tpu.memory_space<vmem>>, vector<1x1x32x8xf32>
    %160 = vector.shape_cast %159 : vector<1x1x32x8xf32> to vector<32x8xf32>
    %cst_131 = arith.constant dense<0.000000e+00> : vector<16x8xf32>
    %161 = tpu.matmul %29, %160, %cst_131 {dimension_numbers = #tpu.dot_dimension_numbers<[1], [0], [0], [1], [0, 0, 1, 1], [], []>} : vector<16x32xf32>, vector<32x8xf32>, vector<16x8xf32> -> vector<16x8xf32>
    %c0_132 = arith.constant 0 : index
    %c3_133 = arith.constant 3 : index
    %c0_134 = arith.constant 0 : index
    %c0_135 = arith.constant 0 : index
    %162 = vector.load %arg9[%c0_132, %c3_133, %c0_134, %c0_135] : memref<1x4x1x8xf32, #tpu.memory_space<vmem>>, vector<1x1x1x8xf32>
    %163 = vector.shape_cast %162 : vector<1x1x1x8xf32> to vector<1x8xf32>
    %164 = vector.broadcast %163 : vector<1x8xf32> to vector<16x8xf32>
    %165 = arith.addf %161, %164 : vector<16x8xf32>
    %166 = vector.shape_cast %165 : vector<16x8xf32> to vector<2x8x8xf32>
    %c0_136 = arith.constant 0 : index
    %c3_137 = arith.constant 3 : index
    %c0_138 = arith.constant 0 : index
    %c0_139 = arith.constant 0 : index
    %167 = vector.load %arg7[%c0_136, %c3_137, %c0_138, %c0_139] : memref<1x4x32x8xf32, #tpu.memory_space<vmem>>, vector<1x1x32x8xf32>
    %168 = vector.shape_cast %167 : vector<1x1x32x8xf32> to vector<32x8xf32>
    %cst_140 = arith.constant dense<0.000000e+00> : vector<16x8xf32>
    %169 = tpu.matmul %29, %168, %cst_140 {dimension_numbers = #tpu.dot_dimension_numbers<[1], [0], [0], [1], [0, 0, 1, 1], [], []>} : vector<16x32xf32>, vector<32x8xf32>, vector<16x8xf32> -> vector<16x8xf32>
    %c0_141 = arith.constant 0 : index
    %c3_142 = arith.constant 3 : index
    %c0_143 = arith.constant 0 : index
    %c0_144 = arith.constant 0 : index
    %170 = vector.load %arg10[%c0_141, %c3_142, %c0_143, %c0_144] : memref<1x4x1x8xf32, #tpu.memory_space<vmem>>, vector<1x1x1x8xf32>
    %171 = vector.shape_cast %170 : vector<1x1x1x8xf32> to vector<1x8xf32>
    %172 = vector.broadcast %171 : vector<1x8xf32> to vector<16x8xf32>
    %173 = arith.addf %169, %172 : vector<16x8xf32>
    %174 = vector.shape_cast %173 : vector<16x8xf32> to vector<2x8x8xf32>
    "tpu.trace_start"() <{level = 10 : i32, message = "bqd,bkd->bqk"}> : () -> ()
    %cst_145 = arith.constant dense<0.000000e+00> : vector<2x8x8xf32>
    %175 = tpu.matmul %158, %166, %cst_145 {dimension_numbers = #tpu.dot_dimension_numbers<[2], [2], [1], [1], [0, 0, 0, 1, 1, 1], [0], [0]>} : vector<2x8x8xf32>, vector<2x8x8xf32>, vector<2x8x8xf32> -> vector<2x8x8xf32>
    "tpu.trace_stop"() : () -> ()
    %cst_146 = arith.constant dense<0xFF800000> : vector<2x8xf32>
    %176 = vector.multi_reduction <maximumf>, %175, %cst_146 [2] : vector<2x8x8xf32> to vector<2x8xf32>
    %177 = vector.shape_cast %176 : vector<2x8xf32> to vector<2x8x1xf32>
    %178 = vector.broadcast %177 : vector<2x8x1xf32> to vector<2x8x8xf32>
    %179 = arith.subf %175, %178 : vector<2x8x8xf32>
    %180 = math.exp %179 : vector<2x8x8xf32>
    %cst_147 = arith.constant dense<0.000000e+00> : vector<2x8xf32>
    %181 = vector.multi_reduction <add>, %180, %cst_147 [2] : vector<2x8x8xf32> to vector<2x8xf32>
    %182 = vector.shape_cast %181 : vector<2x8xf32> to vector<2x8x1xf32>
    %183 = vector.broadcast %182 : vector<2x8x1xf32> to vector<2x8x8xf32>
    %184 = arith.divf %180, %183 : vector<2x8x8xf32>
    "tpu.trace_start"() <{level = 10 : i32, message = "bqk,bkd->bqd"}> : () -> ()
    %cst_148 = arith.constant dense<0.000000e+00> : vector<2x8x8xf32>
    %185 = tpu.matmul %184, %174, %cst_148 {dimension_numbers = #tpu.dot_dimension_numbers<[2], [1], [1], [2], [0, 0, 0, 1, 1, 2], [0], [0]>} : vector<2x8x8xf32>, vector<2x8x8xf32>, vector<2x8x8xf32> -> vector<2x8x8xf32>
    "tpu.trace_stop"() : () -> ()
    %186 = vector.shape_cast %185 : vector<2x8x8xf32> to vector<16x8xf32>
    %c0_149 = arith.constant 0 : index
    %c3_150 = arith.constant 3 : index
    %c0_151 = arith.constant 0 : index
    %c0_152 = arith.constant 0 : index
    %187 = vector.load %arg11[%c0_149, %c3_150, %c0_151, %c0_152] : memref<1x4x8x32xf32, #tpu.memory_space<vmem>>, vector<1x1x8x32xf32>
    %188 = vector.shape_cast %187 : vector<1x1x8x32xf32> to vector<8x32xf32>
    %cst_153 = arith.constant dense<0.000000e+00> : vector<16x32xf32>
    %189 = tpu.matmul %186, %188, %cst_153 {dimension_numbers = #tpu.dot_dimension_numbers<[1], [0], [0], [1], [0, 0, 1, 1], [], []>} : vector<16x8xf32>, vector<8x32xf32>, vector<16x32xf32> -> vector<16x32xf32>
    %190 = arith.addf %150, %189 : vector<16x32xf32>
    %c0_154 = arith.constant 0 : index
    %c0_155 = arith.constant 0 : index
    %c0_156 = arith.constant 0 : index
    %191 = vector.load %arg12[%c0_154, %c0_155, %c0_156] : memref<1x1x32xf32, #tpu.memory_space<vmem>>, vector<1x1x32xf32>
    %192 = vector.shape_cast %191 : vector<1x1x32xf32> to vector<1x32xf32>
    %193 = vector.broadcast %192 : vector<1x32xf32> to vector<16x32xf32>
    %194 = arith.addf %190, %193 : vector<16x32xf32>
    %195 = arith.addf %3, %194 : vector<16x32xf32>
    %c0_157 = arith.constant 0 : index
    %c0_158 = arith.constant 0 : index
    %c0_159 = arith.constant 0 : index
    %196 = vector.load %arg13[%c0_157, %c0_158, %c0_159] : memref<1x1x32xf32, #tpu.memory_space<vmem>>, vector<1x1x32xf32>
    %197 = vector.shape_cast %196 : vector<1x1x32xf32> to vector<1x32xf32>
    %c0_160 = arith.constant 0 : index
    %c0_161 = arith.constant 0 : index
    %c0_162 = arith.constant 0 : index
    %198 = vector.load %arg14[%c0_160, %c0_161, %c0_162] : memref<1x1x32xf32, #tpu.memory_space<vmem>>, vector<1x1x32xf32>
    %199 = vector.shape_cast %198 : vector<1x1x32xf32> to vector<1x32xf32>
    %cst_163 = arith.constant dense<0.000000e+00> : vector<16xf32>
    %200 = vector.multi_reduction <add>, %195, %cst_163 [1] : vector<16x32xf32> to vector<16xf32>
    %201 = vector.shape_cast %200 : vector<16xf32> to vector<16x1xf32>
    %cst_164 = arith.constant 3.200000e+01 : f32
    %202 = vector.broadcast %cst_164 : f32 to vector<16x1xf32>
    %203 = arith.divf %201, %202 : vector<16x1xf32>
    %204 = vector.broadcast %203 : vector<16x1xf32> to vector<16x32xf32>
    %205 = arith.subf %195, %204 : vector<16x32xf32>
    %206 = arith.mulf %205, %205 : vector<16x32xf32>
    %cst_165 = arith.constant dense<0.000000e+00> : vector<16xf32>
    %207 = vector.multi_reduction <add>, %206, %cst_165 [1] : vector<16x32xf32> to vector<16xf32>
    %208 = vector.shape_cast %207 : vector<16xf32> to vector<16x1xf32>
    %cst_166 = arith.constant 3.200000e+01 : f32
    %209 = vector.broadcast %cst_166 : f32 to vector<16x1xf32>
    %210 = arith.divf %208, %209 : vector<16x1xf32>
    %211 = vector.broadcast %203 : vector<16x1xf32> to vector<16x32xf32>
    %212 = arith.subf %195, %211 : vector<16x32xf32>
    %cst_167 = arith.constant 9.99999974E-6 : f32
    %213 = vector.broadcast %cst_167 : f32 to vector<16x1xf32>
    %214 = arith.addf %210, %213 : vector<16x1xf32>
    %215 = math.rsqrt %214 : vector<16x1xf32>
    %216 = vector.broadcast %215 : vector<16x1xf32> to vector<16x32xf32>
    %217 = arith.mulf %212, %216 : vector<16x32xf32>
    %218 = vector.broadcast %197 : vector<1x32xf32> to vector<16x32xf32>
    %219 = arith.mulf %217, %218 : vector<16x32xf32>
    %220 = vector.broadcast %199 : vector<1x32xf32> to vector<16x32xf32>
    %221 = arith.addf %219, %220 : vector<16x32xf32>
    %c0_168 = arith.constant 0 : index
    %c0_169 = arith.constant 0 : index
    %c0_170 = arith.constant 0 : index
    %222 = vector.load %arg15[%c0_168, %c0_169, %c0_170] : memref<1x32x64xf32, #tpu.memory_space<vmem>>, vector<1x32x64xf32>
    %223 = vector.shape_cast %222 : vector<1x32x64xf32> to vector<32x64xf32>
    %cst_171 = arith.constant dense<0.000000e+00> : vector<16x64xf32>
    %224 = tpu.matmul %221, %223, %cst_171 {dimension_numbers = #tpu.dot_dimension_numbers<[1], [0], [0], [1], [0, 0, 1, 1], [], []>} : vector<16x32xf32>, vector<32x64xf32>, vector<16x64xf32> -> vector<16x64xf32>
    %c0_172 = arith.constant 0 : index
    %c0_173 = arith.constant 0 : index
    %c0_174 = arith.constant 0 : index
    %225 = vector.load %arg16[%c0_172, %c0_173, %c0_174] : memref<1x1x64xf32, #tpu.memory_space<vmem>>, vector<1x1x64xf32>
    %226 = vector.shape_cast %225 : vector<1x1x64xf32> to vector<1x64xf32>
    %227 = vector.broadcast %226 : vector<1x64xf32> to vector<16x64xf32>
    %228 = arith.addf %224, %227 : vector<16x64xf32>
    %cst_175 = arith.constant 0.000000e+00 : f32
    %229 = vector.broadcast %cst_175 : f32 to vector<16x64xf32>
    %230 = arith.maximumf %228, %229 : vector<16x64xf32>
    %c0_176 = arith.constant 0 : index
    %c0_177 = arith.constant 0 : index
    %c0_178 = arith.constant 0 : index
    %231 = vector.load %arg17[%c0_176, %c0_177, %c0_178] : memref<1x64x32xf32, #tpu.memory_space<vmem>>, vector<1x64x32xf32>
    %232 = vector.shape_cast %231 : vector<1x64x32xf32> to vector<64x32xf32>
    %cst_179 = arith.constant dense<0.000000e+00> : vector<16x32xf32>
    %233 = tpu.matmul %230, %232, %cst_179 {dimension_numbers = #tpu.dot_dimension_numbers<[1], [0], [0], [1], [0, 0, 1, 1], [], []>} : vector<16x64xf32>, vector<64x32xf32>, vector<16x32xf32> -> vector<16x32xf32>
    %c0_180 = arith.constant 0 : index
    %c0_181 = arith.constant 0 : index
    %c0_182 = arith.constant 0 : index
    %234 = vector.load %arg18[%c0_180, %c0_181, %c0_182] : memref<1x1x32xf32, #tpu.memory_space<vmem>>, vector<1x1x32xf32>
    %235 = vector.shape_cast %234 : vector<1x1x32xf32> to vector<1x32xf32>
    %236 = vector.broadcast %235 : vector<1x32xf32> to vector<16x32xf32>
    %237 = arith.addf %233, %236 : vector<16x32xf32>
    %238 = arith.addf %195, %237 : vector<16x32xf32>
    %c0_183 = arith.constant 0 : index
    %c0_184 = arith.constant 0 : index
    %239 = vector.load %arg21[%c0_183, %c0_184] : memref<16x32xf32, #tpu.memory_space<vmem>>, vector<16x32xf32>
    tpu.vector_store %arg21[%c0_183, %c0_184], %238 {strides = array<i32>} : memref<16x32xf32, #tpu.memory_space<vmem>>, vector<16x32xf32>,
    %c1_i32 = arith.constant 1 : i32
    %240 = arith.cmpi eq, %arg1, %c1_i32 : i32
    %241 = arith.extui %240 : i1 to i32
    %c0_i32_185 = arith.constant 0 : i32
    %242 = arith.cmpi ne, %241, %c0_i32_185 : i32
    scf.if %242 {
      %c0_186 = arith.constant 0 : index
      %c0_187 = arith.constant 0 : index
      %243 = vector.load %arg19[%c0_186, %c0_187] : memref<1x32xf32, #tpu.memory_space<vmem>>, vector<1x32xf32>
      %c0_188 = arith.constant 0 : index
      %c0_189 = arith.constant 0 : index
      %244 = vector.load %arg20[%c0_188, %c0_189] : memref<1x32xf32, #tpu.memory_space<vmem>>, vector<1x32xf32>
      %cst_190 = arith.constant dense<0.000000e+00> : vector<16xf32>
      %245 = vector.multi_reduction <add>, %238, %cst_190 [1] : vector<16x32xf32> to vector<16xf32>
      %246 = vector.shape_cast %245 : vector<16xf32> to vector<16x1xf32>
      %cst_191 = arith.constant 3.200000e+01 : f32
      %247 = vector.broadcast %cst_191 : f32 to vector<16x1xf32>
      %248 = arith.divf %246, %247 : vector<16x1xf32>
      %249 = vector.broadcast %248 : vector<16x1xf32> to vector<16x32xf32>
      %250 = arith.subf %238, %249 : vector<16x32xf32>
      %251 = arith.mulf %250, %250 : vector<16x32xf32>
      %cst_192 = arith.constant dense<0.000000e+00> : vector<16xf32>
      %252 = vector.multi_reduction <add>, %251, %cst_192 [1] : vector<16x32xf32> to vector<16xf32>
      %253 = vector.shape_cast %252 : vector<16xf32> to vector<16x1xf32>
      %cst_193 = arith.constant 3.200000e+01 : f32
      %254 = vector.broadcast %cst_193 : f32 to vector<16x1xf32>
      %255 = arith.divf %253, %254 : vector<16x1xf32>
      %256 = vector.broadcast %248 : vector<16x1xf32> to vector<16x32xf32>
      %257 = arith.subf %238, %256 : vector<16x32xf32>
      %cst_194 = arith.constant 9.99999974E-6 : f32
      %258 = vector.broadcast %cst_194 : f32 to vector<16x1xf32>
      %259 = arith.addf %255, %258 : vector<16x1xf32>
      %260 = math.rsqrt %259 : vector<16x1xf32>
      %261 = vector.broadcast %260 : vector<16x1xf32> to vector<16x32xf32>
      %262 = arith.mulf %257, %261 : vector<16x32xf32>
      %263 = vector.broadcast %243 : vector<1x32xf32> to vector<16x32xf32>
      %264 = arith.mulf %262, %263 : vector<16x32xf32>
      %265 = vector.broadcast %244 : vector<1x32xf32> to vector<16x32xf32>
      %266 = arith.addf %264, %265 : vector<16x32xf32>
      %c0_195 = arith.constant 0 : index
      %c0_196 = arith.constant 0 : index
      %267 = vector.load %arg21[%c0_195, %c0_196] : memref<16x32xf32, #tpu.memory_space<vmem>>, vector<16x32xf32>
      tpu.vector_store %arg21[%c0_195, %c0_196], %266 {strides = array<i32>} : memref<16x32xf32, #tpu.memory_space<vmem>>, vector<16x32xf32>,
    } else {
    }
    return
  }
  func.func @transform_0(%arg0: i32, %arg1: i32) -> (i32, i32) {
    %c0_i32 = arith.constant 0 : i32
    %c0_i32_0 = arith.constant 0 : i32
    return %arg0, %c0_i32 : i32, i32
  }
  func.func @transform_1(%arg0: i32, %arg1: i32) -> (i32, i32, i32) {
    %c0_i32 = arith.constant 0 : i32
    %c0_i32_0 = arith.constant 0 : i32
    %c0_i32_1 = arith.constant 0 : i32
    return %arg1, %c0_i32, %c0_i32_0 : i32, i32, i32
  }
  func.func @transform_2(%arg0: i32, %arg1: i32) -> (i32, i32, i32) {
    %c0_i32 = arith.constant 0 : i32
    %c0_i32_0 = arith.constant 0 : i32
    %c0_i32_1 = arith.constant 0 : i32
    return %arg1, %c0_i32, %c0_i32_0 : i32, i32, i32
  }
  func.func @transform_3(%arg0: i32, %arg1: i32) -> (i32, i32, i32, i32) {
    %c0_i32 = arith.constant 0 : i32
    %c0_i32_0 = arith.constant 0 : i32
    %c0_i32_1 = arith.constant 0 : i32
    %c0_i32_2 = arith.constant 0 : i32
    return %arg1, %c0_i32, %c0_i32_0, %c0_i32_1 : i32, i32, i32, i32
  }
  func.func @transform_4(%arg0: i32, %arg1: i32) -> (i32, i32, i32, i32) {
    %c0_i32 = arith.constant 0 : i32
    %c0_i32_0 = arith.constant 0 : i32
    %c0_i32_1 = arith.constant 0 : i32
    %c0_i32_2 = arith.constant 0 : i32
    return %arg1, %c0_i32, %c0_i32_0, %c0_i32_1 : i32, i32, i32, i32
  }
  func.func @transform_5(%arg0: i32, %arg1: i32) -> (i32, i32, i32, i32) {
    %c0_i32 = arith.constant 0 : i32
    %c0_i32_0 = arith.constant 0 : i32
    %c0_i32_1 = arith.constant 0 : i32
    %c0_i32_2 = arith.constant 0 : i32
    return %arg1, %c0_i32, %c0_i32_0, %c0_i32_1 : i32, i32, i32, i32
  }
  func.func @transform_6(%arg0: i32, %arg1: i32) -> (i32, i32, i32, i32) {
    %c0_i32 = arith.constant 0 : i32
    %c0_i32_0 = arith.constant 0 : i32
    %c0_i32_1 = arith.constant 0 : i32
    %c0_i32_2 = arith.constant 0 : i32
    return %arg1, %c0_i32, %c0_i32_0, %c0_i32_1 : i32, i32, i32, i32
  }
  func.func @transform_7(%arg0: i32, %arg1: i32) -> (i32, i32, i32, i32) {
    %c0_i32 = arith.constant 0 : i32
    %c0_i32_0 = arith.constant 0 : i32
    %c0_i32_1 = arith.constant 0 : i32
    %c0_i32_2 = arith.constant 0 : i32
    return %arg1, %c0_i32, %c0_i32_0, %c0_i32_1 : i32, i32, i32, i32
  }
  func.func @transform_8(%arg0: i32, %arg1: i32) -> (i32, i32, i32, i32) {
    %c0_i32 = arith.constant 0 : i32
    %c0_i32_0 = arith.constant 0 : i32
    %c0_i32_1 = arith.constant 0 : i32
    %c0_i32_2 = arith.constant 0 : i32
    return %arg1, %c0_i32, %c0_i32_0, %c0_i32_1 : i32, i32, i32, i32
  }
  func.func @transform_9(%arg0: i32, %arg1: i32) -> (i32, i32, i32, i32) {
    %c0_i32 = arith.constant 0 : i32
    %c0_i32_0 = arith.constant 0 : i32
    %c0_i32_1 = arith.constant 0 : i32
    %c0_i32_2 = arith.constant 0 : i32
    return %arg1, %c0_i32, %c0_i32_0, %c0_i32_1 : i32, i32, i32, i32
  }
  func.func @transform_10(%arg0: i32, %arg1: i32) -> (i32, i32, i32) {
    %c0_i32 = arith.constant 0 : i32
    %c0_i32_0 = arith.constant 0 : i32
    %c0_i32_1 = arith.constant 0 : i32
    return %arg1, %c0_i32, %c0_i32_0 : i32, i32, i32
  }
  func.func @transform_11(%arg0: i32, %arg1: i32) -> (i32, i32, i32) {
    %c0_i32 = arith.constant 0 : i32
    %c0_i32_0 = arith.constant 0 : i32
    %c0_i32_1 = arith.constant 0 : i32
    return %arg1, %c0_i32, %c0_i32_0 : i32, i32, i32
  }
  func.func @transform_12(%arg0: i32, %arg1: i32) -> (i32, i32, i32) {
    %c0_i32 = arith.constant 0 : i32
    %c0_i32_0 = arith.constant 0 : i32
    %c0_i32_1 = arith.constant 0 : i32
    return %arg1, %c0_i32, %c0_i32_0 : i32, i32, i32
  }
  func.func @transform_13(%arg0: i32, %arg1: i32) -> (i32, i32, i32) {
    %c0_i32 = arith.constant 0 : i32
    %c0_i32_0 = arith.constant 0 : i32
    %c0_i32_1 = arith.constant 0 : i32
    return %arg1, %c0_i32, %c0_i32_0 : i32, i32, i32
  }
  func.func @transform_14(%arg0: i32, %arg1: i32) -> (i32, i32, i32) {
    %c0_i32 = arith.constant 0 : i32
    %c0_i32_0 = arith.constant 0 : i32
    %c0_i32_1 = arith.constant 0 : i32
    return %arg1, %c0_i32, %c0_i32_0 : i32, i32, i32
  }
  func.func @transform_15(%arg0: i32, %arg1: i32) -> (i32, i32, i32) {
    %c0_i32 = arith.constant 0 : i32
    %c0_i32_0 = arith.constant 0 : i32
    %c0_i32_1 = arith.constant 0 : i32
    return %arg1, %c0_i32, %c0_i32_0 : i32, i32, i32
  }
  func.func @transform_16(%arg0: i32, %arg1: i32) -> (i32, i32, i32) {
    %c0_i32 = arith.constant 0 : i32
    %c0_i32_0 = arith.constant 0 : i32
    %c0_i32_1 = arith.constant 0 : i32
    return %arg1, %c0_i32, %c0_i32_0 : i32, i32, i32
  }
  func.func @transform_17(%arg0: i32, %arg1: i32) -> (i32, i32) {
    %c0_i32 = arith.constant 0 : i32
    %c0_i32_0 = arith.constant 0 : i32
    %c0_i32_1 = arith.constant 0 : i32
    return %c0_i32, %c0_i32_0 : i32, i32
  }
  func.func @transform_18(%arg0: i32, %arg1: i32) -> (i32, i32) {
    %c0_i32 = arith.constant 0 : i32
    %c0_i32_0 = arith.constant 0 : i32
    %c0_i32_1 = arith.constant 0 : i32
    return %c0_i32, %c0_i32_0 : i32, i32
  }
  func.func @transform_19(%arg0: i32, %arg1: i32) -> (i32, i32) {
    %c0_i32 = arith.constant 0 : i32
    %c0_i32_0 = arith.constant 0 : i32
    return %arg0, %c0_i32 : i32, i32
  }
}

</mosaic_0001>

<bundles_post_ra>
// kernel: tpu_custom_call.1
= control target key start
LH: loop header
LB: loop body
LE: loop exit
PB: predicated region body
PF: predicated region fallthrough
CT: control target
= control target key end

     0   :  { %s3325_s0 = inlined_call_operand.vmem [shape: f32[16,32], index: 0, kind: input, shape index: {}]   ;;  %s3326_s1 = inlined_call_operand.vmem [shape: f32[2,1,32], index: 1, kind: input, shape index: {}]   ;;  %s3327_s2 = inlined_call_operand.vmem [shape: f32[2,1,32], index: 2, kind: input, shape index: {}]   ;;  %s3328_s3 = inlined_call_operand.vmem [shape: f32[2,4,32,8], index: 3, kind: input, shape index: {}]   ;;  %s3329_s4 = inlined_call_operand.vmem [shape: f32[2,4,32,8], index: 4, kind: input, shape index: {}]   ;;  %s3330_s5 = inlined_call_operand.vmem [shape: f32[2,4,32,8], index: 5, kind: input, shape index: {}]   ;;  %s3331_s6 = inlined_call_operand.vmem [shape: f32[2,4,1,8], index: 6, kind: input, shape index: {}]   ;;  %s3332_s7 = inlined_call_operand.vmem [shape: f32[2,4,1,8], index: 7, kind: input, shape index: {}]   ;;  %s3333_s8 = inlined_call_operand.vmem [shape: f32[2,4,1,8], index: 8, kind: input, shape index: {}]   ;;  %s3334_s9 = inlined_call_operand.vmem [shape: f32[2,4,8,32], index: 9, kind: input, shape index: {}]   ;;  %s3335_s10 = inlined_call_operand.vmem [shape: f32[2,1,32], index: 10, kind: input, shape index: {}]   ;;  %s3336_s11 = inlined_call_operand.vmem [shape: f32[2,1,32], index: 11, kind: input, shape index: {}]   ;;  %s3337_s12 = inlined_call_operand.vmem [shape: f32[2,1,32], index: 12, kind: input, shape index: {}]   ;;  %s3338_s13 = inlined_call_operand.vmem [shape: f32[2,32,64], index: 13, kind: input, shape index: {}]   ;;  %s3339_s14 = inlined_call_operand.vmem [shape: f32[2,1,64], index: 14, kind: input, shape index: {}]   ;;  %s3340_s15 = inlined_call_operand.vmem [shape: f32[2,64,32], index: 15, kind: input, shape index: {}]   ;;  %s3341_s16 = inlined_call_operand.vmem [shape: f32[2,1,32], index: 16, kind: input, shape index: {}]   ;;  %s3342_s17 = inlined_call_operand.vmem [shape: f32[1,32], index: 17, kind: input, shape index: {}]   ;;  %s3343_s18 = inlined_call_operand.vmem [shape: f32[1,32], index: 18, kind: input, shape index: {}]   ;;  %s3344_s19 = inlined_call_operand.hbm [shape: f32[16,32], index: 19, kind: output, shape index: {}]  }
   0x1   :  { %3349 = sst [smem:[#allocation9_spill]] %s3325_s0 }
   0x2   :  { %3350 = sst [smem:[#allocation10_spill]] %s3326_s1 }
   0x3   :  { %3351 = sst [smem:[#allocation11_spill]] %s3327_s2 }
   0x4   :  { %3352 = sst [smem:[#allocation12_spill]] %s3328_s3 }
   0x5   :  { %3353 = sst [smem:[#allocation13_spill]] %s3329_s4 }
   0x6   :  { %3354 = sst [smem:[#allocation14_spill]] %s3330_s5 }
   0x7   :  { %3355 = sst [smem:[#allocation15_spill]] %s3331_s6 }
   0x8   :  { %3356 = sst [smem:[#allocation16_spill]] %s3332_s7 }
   0x9   :  { %3357 = sst [smem:[#allocation17_spill]] %s3333_s8 }
   0xa   :  { %3358 = sst [smem:[#allocation18_spill]] %s3334_s9 }
   0xb   :  { %3359 = sst [smem:[#allocation19_spill]] %s3335_s10 }
   0xc   :  { %3360 = sst [smem:[#allocation20_spill]] %s3342_s17 }
   0xd   :  { %3361 = sst [smem:[#allocation21_spill]] %s3343_s18 }
   0xe   :  { %3362 = sst [smem:[#allocation22_spill]] %s3344_s19 }
   0xf   :  { %24 = vsyncpa [#allocation3], 0  ;;  %s2913_s0 = smov 0   ;;  %s2915_s30 = smov 0  }
  0x10   :  { %s2917_s20 = smov 0  }
  0x11 LB: > { %3363 = sst [smem:[#allocation5_spill]] %s2803_s30  ;;  %s39_s1 = sadd.s32 1, %s2803_s30  ;;  %s2807_s20 = sphi %s2917_s20, %s30_s20   ;;  %s2803_s30 = sphi %s2915_s30, %s3392_s30   ;;  %s2799_s0 = sphi %s2913_s0, %s3391_s0  }
  0x12   : > { %3364 = sst [smem:[#allocation6_spill]] %s2807_s20  ;;  %p40_p0 = scmp.ge.s32.totalorder %s39_s1, 2 }
  0x13   : > { %p2514_p1 = scmp.ge.s32.totalorder %s2807_s20, 1  ;;  %p694_p2 = scmp.lt.s32.totalorder %s2807_s20, 3 }
  0x14   : > { %s3394_s1 = smov (%p40_p0, %s39_s1), 0 }
  0x15   : > { %3365 = sst [smem:[#allocation7_spill]] %s3394_s1  ;;  %p695_p3 = pnand %p2514_p1, %p694_p2 }
  0x17   : > { %698 = sbr.rel (%p695_p3) target bundleno = 3436 (0xd6c), region = 96 }
  0x1c   : > { %p814_p4 = scmp.lt.s32.totalorder %s2799_s0, 1  ;;  %s3368_s19 = sld [smem:[#allocation12_spill]] }
  0x1d   : > { %s3370_s4 = sld [smem:[#allocation13_spill]]  ;;  %p2530_p5 = scmp.ne.s32.totalorder %s2799_s0, 0 }
  0x1e   : > { %s2936_s22 = scalar_select %p814_p4, %s2799_s0, 1 }
  0x1f   : > { %s3371_s5 = sld [smem:[#allocation14_spill]] }
  0x20   : > { %s2644_s29 = sshll.u32 %s2936_s22, 7  ;;  %s2521_s21 = sshll.u32 %s2936_s22, 2 }
  0x21   : > { %s3372_s6 = sld [smem:[#allocation15_spill]]  ;;  %s2647_s23 = sshll.u32 %s2936_s22, 5 }
  0x22   : > { %s2951_s2 = scalar_lea.vmem %s3368_s19, %s2644_s29  ;;  %s3373_s7 = sld [smem:[#allocation16_spill]] }
  0x23   : > { %3369 = sst [smem:[#allocation8_spill]] %s2951_s2  ;;  %s2956_s18 = scalar_lea.vmem %s3370_s4, %s2644_s29 }
  0x24   : > { %s3374_s8 = sld [smem:[#allocation17_spill]]  ;;  %s857_s17 = scalar_lea.vmem %s3336_s11, %s2936_s22 }
  0x25   : > { %s2961_s3 = scalar_lea.vmem %s3371_s5, %s2644_s29  ;;  %s3376_s9 = sld [smem:[#allocation18_spill]] }
  0x26   : > { %s860_s2 = scalar_lea.vmem %s3337_s12, %s2936_s22  ;;  %s868_s29 = scalar_lea.vmem %s3339_s14, %s2936_s22 }
  0x27   : > { %s2966_s28 = scalar_lea.vmem %s3372_s6, %s2521_s21  ;;  %s2649_s5 = sshll.u32 %s2936_s22, 6 }
  0x28   : > { %s2971_s19 = scalar_lea.vmem %s3373_s7, %s2521_s21  ;;  %s3009_s10 = scalar_lea.vmem %s3340_s15, %s2649_s5 }
  0x29   : > { %s876_s7 = scalar_lea.vmem %s3341_s16, %s2936_s22  ;;  %881 = sbr.rel (%p2530_p5) target bundleno = 52 (0x34), region = 100 }
  0x2a   : > { %s2976_s20 = scalar_lea.vmem %s3374_s8, %s2521_s21  ;;  %s2999_s8 = scalar_lea.vmem %s3338_s13, %s2647_s23 }
  0x2b   : > { %s2986_s26 = scalar_lea.vmem %s3376_s9, %s2647_s23  ;;  %s3377_s21 = sld [smem:[#allocation9_spill]] (!%p2530_p5) }
  0x2e   : > { %vm884_vm0 = vcmask 261120  }
  0x31   : > { %v882_v0 = vld [vmem:[%s3377_s21] sm:$0xff]  ;;  %v883_v1 = vld [vmem:[%s3377_s21 + $0x8] sm:$0xff] }
  0x32   : > { %885 = vst.msk [vmem:[#allocation2] sm:$0xff] %vm884_vm0, %v882_v0 }
  0x33   : > { %886 = vst.msk [vmem:[#allocation2 + $0x8] sm:$0xff] %vm884_vm0, %v883_v1 }
  0x34 PF: > { %vm891_vm1 = vcmask 261120   ;;  %v2809_v6 = vmov 32.0   ;;  %s3378_s9 = sld [smem:[#allocation8_spill]]  ;;  %v993_v24 = vld [vmem:[%s2956_s18 + $0x18] sm:$0xff]  ;;  %v992_v27 = vld [vmem:[%s2956_s18 + $0x10] sm:$0xff]  ;;  %v991_v30 = vld [vmem:[%s2956_s18 + $0x8] sm:$0xff] }
  0x35   : > { %2703 = vrcp.f32 %v2809_v6  ;;  %v1024_v25 = vld [vmem:[%s2961_s3 + $0x18] sm:$0xff]  ;;  %1010 = vmatpush.msra.mxu1 %v993_v24  ;;  %v1023_v28 = vld [vmem:[%s2961_s3 + $0x10] sm:$0xff]  ;;  %v1022_v31 = vld [vmem:[%s2961_s3 + $0x8] sm:$0xff]  ;;  %s3379_s24 = sld [smem:[#allocation10_spill]]  ;;  %vm1052_vm9 = vcmask 64512   ;;  %p2639_p6 = scmp.ne.s32.totalorder %s2799_s0, 1 }
  0x36   : > { %1041 = vmatpush.msra.mxu2 %v1024_v25  ;;  %v990_v33 = vld [vmem:[%s2956_s18] sm:$0xff]  ;;  %v2553_v39 = vld [vmem:[%s2956_s18 + $0x38] sm:$0xff]  ;;  %v2552_v41 = vld [vmem:[%s2956_s18 + $0x30] sm:$0xff]  ;;  %s3381_s23 = sld [smem:[#allocation11_spill]] }
  0x37   : > { %1011 = vmatpush.msra.mxu1 %v992_v27  ;;  %v1021_v34 = vld [vmem:[%s2961_s3] sm:$0xff]  ;;  %v2551_v44 = vld [vmem:[%s2956_s18 + $0x28] sm:$0xff]  ;;  %s3386_s5 = sld [smem:[#allocation21_spill]] (!%p2639_p6) }
  0x38   : > { %1042 = vmatpush.msra.mxu2 %v1023_v28  ;;  %v2550_v47 = vld [vmem:[%s2956_s18 + $0x20] sm:$0xff] }
  0x39   : > { %v887_v2 = vld [vmem:[#allocation2] sm:$0xff]  ;;  %1012 = vmatpush.msra.mxu1 %v991_v30 }
  0x3a   : > { %v892_v3 = vsel %vm891_vm1, %v887_v2, 0.0  ;;  %v888_v4 = vld [vmem:[#allocation2 + $0x8] sm:$0xff]  ;;  %v956_v23 = vld [vmem:[%s3378_s9 + $0x18] sm:$0xff]  ;;  %v955_v26 = vld [vmem:[%s3378_s9 + $0x10] sm:$0xff]  ;;  %1043 = vmatpush.msra.mxu2 %v1022_v31 }
  0x3b   : > { %893 = vadd.xlane.f32.xlu0 %v892_v3  ;;  %v895_v5 = vsel %vm891_vm1, %v888_v4, 0.0  ;;  %v2704_v7 = vpop.eup %2703  ;;  %979 = vmatpush.msra.mxu0 %v956_v23  ;;  %v954_v29 = vld [vmem:[%s3378_s9 + $0x8] sm:$0xff]  ;;  %v953_v32 = vld [vmem:[%s3378_s9] sm:$0xff]  ;;  %v2546_v38 = vld [vmem:[%s3378_s9 + $0x38] sm:$0xff]  ;;  %s3380_s6 = scalar_lea.vmem %s3379_s24, %s2936_s22 }
  0x3c   : > { %v899_v8 = vmul.f32 32.0, %v2704_v7  ;;  %vm903_vm2 = vweird.f32 %v2704_v7  ;;  %1013 = vmatpush.msra.mxu1 %v990_v33  ;;  %1044 = vmatpush.msra.mxu2 %v1021_v34  ;;  %v2545_v40 = vld [vmem:[%s3378_s9 + $0x30] sm:$0xff]  ;;  %v2544_v43 = vld [vmem:[%s3378_s9 + $0x28] sm:$0xff]  ;;  %v2543_v46 = vld [vmem:[%s3378_s9 + $0x20] sm:$0xff]  ;;  %s3382_s1 = scalar_lea.vmem %s3381_s23, %s2936_s22 }
  0x3d   : > { %980 = vmatpush.msra.mxu0 %v955_v26  ;;  %v2684_v57 = vld [vmem:[%s3380_s6] ss:$0 sm:$0xff]  ;;  %v3104_v23 = vld [vmem:[%s2971_s19 + $0x1] ss:$0 sm:$0xff] }
  0x3e   : > { %v900_v9 = vsub.f32 1.0, %v899_v8  ;;  %1222 = vmatpush.msrb.mxu1 %v2546_v38  ;;  %1255 = vmatpush.msrb.mxu2 %v2553_v39  ;;  %v2685_v60 = vld [vmem:[%s3382_s1] ss:$0 sm:$0xff] }
  0x3f   : > { %981 = vmatpush.msra.mxu0 %v954_v29  ;;  %v2686_v8 = vld [vmem:[%s2966_s28] ss:$0 sm:$0xff] }
  0x40   : > { %v901_v10 = vmul.f32 %v2704_v7, %v900_v9  ;;  %1223 = vmatpush.msrb.mxu1 %v2545_v40  ;;  %1256 = vmatpush.msrb.mxu2 %v2552_v41  ;;  %v2560_v40 = vld [vmem:[%s2961_s3 + $0x38] sm:$0xff]  ;;  %v2559_v41 = vld [vmem:[%s2961_s3 + $0x30] sm:$0xff] }
  0x41   : > { %982 = vmatpush.msra.mxu0 %v953_v32 }
  0x42   : > { %v902_v11 = vadd.f32 %v2704_v7, %v901_v10  ;;  %1224 = vmatpush.msrb.mxu1 %v2544_v43  ;;  %1257 = vmatpush.msrb.mxu2 %v2551_v44  ;;  %v2557_v43 = vld [vmem:[%s2961_s3 + $0x20] sm:$0xff] }
  0x43   : > { %896 = vadd.xlane.f32.xlu0 %v895_v5 }
  0x44   : > { %v3024_v12 = vsel %vm903_vm2, %v2704_v7, %v902_v11  ;;  %1225 = vmatpush.msrb.mxu1 %v2543_v46  ;;  %1258 = vmatpush.msrb.mxu2 %v2550_v47  ;;  %v2687_v7 = vld [vmem:[%s2971_s19] ss:$0 sm:$0xff] }
  0xae   : > { %v894_v13 = vpop.xlane.xlu0 %893 }
  0xaf   : > { %v905_v14 = vmul.f32 %v3024_v12, %v894_v13 }
  0xb1   : > { %v3027_v15 = vsub.f32 %v887_v2, %v905_v14  ;;  %v2688_v14 = vld [vmem:[%s2976_s20] ss:$0 sm:$0xff] }
  0xb3   : > { %v909_v16 = vmul.f32 %v3027_v15, %v3027_v15 }
  0xb5   : > { %v911_v17 = vsel %vm891_vm1, %v909_v16, 0.0 }
  0xb6   : > { %912 = vadd.xlane.f32.xlu1 %v911_v17  ;;  %v897_v18 = vpop.xlane.xlu0 %896 }
  0xb7   : > { %v906_v19 = vmul.f32 %v3024_v12, %v897_v18 }
  0xb9   : > { %v3033_v20 = vsub.f32 %v888_v4, %v906_v19 }
  0xbb   : > { %v910_v21 = vmul.f32 %v3033_v20, %v3033_v20 }
  0xbd   : > { %v914_v22 = vsel %vm891_vm1, %v910_v21, 0.0 }
  0xbe   : > { %915 = vadd.xlane.f32.xlu1 %v914_v22 }
 0x129   : > { %v913_v35 = vpop.xlane.xlu1 %912 }
 0x12a   : > { %v917_v36 = vmul.f32 %v913_v35, %v3024_v12 }
 0x12c   : > { %v919_v37 = vadd.f32 1e-05, %v917_v36 }
 0x12e   : > { %2705 = vrsqrt.f32 %v919_v37  ;;  %vm927_vm4 = vweird.f32 %v919_v37 }
 0x131   : > { %v916_v42 = vpop.xlane.xlu1 %915 }
 0x132   : > { %v918_v45 = vmul.f32 %v916_v42, %v3024_v12  ;;  %v2558_v42 = vld [vmem:[%s2961_s3 + $0x28] sm:$0xff] }
 0x134   : > { %v2706_v48 = vpop.eup %2705  ;;  %v920_v49 = vadd.f32 1e-05, %v918_v45 }
 0x135   : > { %v922_v50 = vmul.f32 %v2706_v48, %v919_v37  ;;  %vm928_vm3 = vweird.f32 %v2706_v48 }
 0x136   : > { %2707 = vrsqrt.f32 %v920_v49  ;;  %vm929_vm5 = vmor %vm927_vm4, %vm928_vm3  ;;  %vm937_vm7 = vweird.f32 %v920_v49 }
 0x137   : > { %v923_v51 = vmul.f32 %v2706_v48, %v922_v50 }
 0x139   : > { %v924_v52 = vmul.f32 0.5, %v923_v51 }
 0x13b   : > { %v925_v53 = vsub.f32 1.5, %v924_v52 }
 0x13c   : > { %v2708_v54 = vpop.eup %2707 }
 0x13d   : > { %v926_v55 = vmul.f32 %v2706_v48, %v925_v53  ;;  %v932_v56 = vmul.f32 %v2708_v54, %v920_v49  ;;  %vm938_vm6 = vweird.f32 %v2708_v54 }
 0x13e   : > { %vm939_vm8 = vmor %vm937_vm7, %vm938_vm6 }
 0x13f   : > { %v930_v58 = vsel %vm929_vm5, %v2706_v48, %v926_v55  ;;  %v933_v59 = vmul.f32 %v2708_v54, %v932_v56 }
 0x140   : > { %v941_v61 = vmul.f32 %v930_v58, %v3027_v15 }
 0x141   : > { %v934_v62 = vmul.f32 0.5, %v933_v59 }
 0x142   : > { %v946_v63 = vmul.f32 %v2684_v57, %v941_v61 }
 0x143   : > { %v935_v0 = vsub.f32 1.5, %v934_v62 }
 0x144   : > { %v3071_v1 = vadd.f32 %v2685_v60, %v946_v63 }
 0x145   : > { %v936_v2 = vmul.f32 %v2708_v54, %v935_v0 }
 0x146   : > { %2531 = vmatmul.msk.f32.vlgmr.msra.gmra.mxu0 %vm891_vm1, %v3071_v1  ;;  %2533 = vmatmul.msk.f32.vlgmr.msra.gmra.mxu1 %vm891_vm1, %v3071_v1 }
 0x147   : > { %v940_v3 = vsel %vm939_vm8, %v2708_v54, %v936_v2  ;;  %2535 = vmatmul.msk.f32.vlgmr.msra.gmra.mxu2 %vm891_vm1, %v3071_v1 }
 0x148   : > { %v942_v4 = vmul.f32 %v940_v3, %v3033_v20 }
 0x14a   : > { %v947_v5 = vmul.f32 %v2684_v57, %v942_v4 }
 0x14c   : > { %v3080_v6 = vadd.f32 %v2685_v60, %v947_v5 }
 0x14e   : > { %2532 = vmatmul.msk.f32.gmra.mxu0 %vm891_vm1, %v3080_v6  ;;  %2534 = vmatmul.msk.f32.gmra.mxu1 %vm891_vm1, %v3080_v6 }
 0x14f   : > { %2536 = vmatmul.msk.f32.gmra.mxu2 %vm891_vm1, %v3080_v6 }
 0x156   : > { %2548 = vmatmul.msk.f32.vlgmr.msrb.gmra.mxu1 %vm891_vm1, %v3071_v1 }
 0x157   : > { %2555 = vmatmul.msk.f32.vlgmr.msrb.gmra.mxu2 %vm891_vm1, %v3071_v1 }
 0x15e   : > { %2549 = vmatmul.msk.f32.gmra.mxu1 %vm891_vm1, %v3080_v6 }
 0x15f   : > { %2556 = vmatmul.msk.f32.gmra.mxu2 %vm891_vm1, %v3080_v6 }
 0x1c3   : > { %v984_v9 = vpop.f32.mrf.mxu0  ;;  %v1015_v10 = vpop.f32.mrf.mxu1 }
 0x1c4   : > { %v1016_v11 = vadd.f32 %v2687_v7, %v1015_v10  ;;  %v985_v13 = vadd.f32 %v2686_v8, %v984_v9  ;;  %v2689_v9 = vld [vmem:[%s2966_s28 + $0x1] ss:$0 sm:$0xff] }
 0x1c6   : > { %2537 = vmatpush.xpose.msk.msra.mxu3 %vm1052_vm9, %v1016_v11 }
 0x1c9   : > { %2538 = vmatmul.msk.f32.vlgmr.msra.gmra.mxu3 %vm1052_vm9, %v985_v13 }
 0x1ca   : > { %v1046_v15 = vpop.f32.mrf.mxu2 }
 0x1cb   : > { %v1018_v16 = vpop.f32.mrf.mxu1  ;;  %v987_v17 = vpop.f32.mrf.mxu0  ;;  %v1047_v19 = vadd.f32 %v2688_v14, %v1046_v15 }
 0x1cc   : > { %v1019_v18 = vadd.f32 %v2687_v7, %v1018_v16  ;;  %v988_v20 = vadd.f32 %v2686_v8, %v987_v17  ;;  %v2691_v17 = vld [vmem:[%s2976_s20 + $0x1] ss:$0 sm:$0xff] }
 0x1ce   : > { %2539 = vmatpush.xpose.msk.msrb.mxu3 %vm1052_vm9, %v1019_v18 }
 0x1d1   : > { %2540 = vmatmul.msk.f32.vlgmr.msrb.gmra.mxu3 %vm1052_vm9, %v988_v20 }
 0x1d2   : > { %1171 = vmatpush.msra.mxu3 %v1047_v19  ;;  %v1049_v21 = vpop.f32.mrf.mxu2 }
 0x1d3   : > { %v1050_v22 = vadd.f32 %v2688_v14, %v1049_v21  ;;  %v1227_v8 = vpop.f32.mrf.mxu1  ;;  %v1199_v14 = vld [vmem:[%s2986_s26] sm:$0xff] }
 0x1d4   : > { %1288 = vmatpush.msrb.mxu3 %v2560_v40  ;;  %v1228_v10 = vadd.f32 %v2689_v9, %v1227_v8  ;;  %v2585_v40 = vld [vmem:[%s2956_s18 + $0x58] sm:$0xff]  ;;  %v2591_v8 = vld [vmem:[%s2961_s3 + $0x50] sm:$0xff] }
 0x1d5   : > { %1194 = vmatpush.msrb.mxu0 %v1050_v22 }
 0x1d6   : > { %1289 = vmatpush.msrb.mxu3 %v2559_v41  ;;  %v2584_v41 = vld [vmem:[%s2956_s18 + $0x50] sm:$0xff] }
 0x1d8   : > { %1290 = vmatpush.msrb.mxu3 %v2558_v42  ;;  %v2583_v42 = vld [vmem:[%s2956_s18 + $0x48] sm:$0xff] }
 0x1da   : > { %v1260_v24 = vpop.f32.mrf.mxu2  ;;  %1291 = vmatpush.msrb.mxu3 %v2557_v43 }
 0x1db   : > { %v1261_v25 = vadd.f32 %v3104_v23, %v1260_v24  ;;  %v1230_v11 = vpop.f32.mrf.mxu1 }
 0x1dc   : > { %v1231_v13 = vadd.f32 %v2689_v9, %v1230_v11  ;;  %v2590_v9 = vld [vmem:[%s2961_s3 + $0x48] sm:$0xff]  ;;  %v2615_v11 = vld [vmem:[%s2956_s18 + $0x78] sm:$0xff] }
 0x1dd   : > { %2564 = vmatpush.xpose.msk.msra.mxu0 %vm1052_vm9, %v1261_v25 }
 0x1e2   : > { %v1263_v2 = vpop.f32.mrf.mxu2 }
 0x1e3   : > { %v1264_v7 = vadd.f32 %v3104_v23, %v1263_v2 }
 0x24c   : > { %v1076_v26 = vpop.f32.mrf.mxu3 }
 0x24d   : > { %v1105_v27 = vsel %vm1052_vm9, %v1076_v26, -inf }
 0x24e   : > { %1106 = vmax.xlane.f32.xlu0 %v1105_v27 }
 0x254   : > { %v1102_v28 = vpop.f32.mrf.mxu3 }
 0x255   : > { %v1108_v29 = vsel %vm1052_vm9, %v1102_v28, -inf }
 0x256   : > { %1109 = vmax.xlane.f32.xlu2 %v1108_v29 }
 0x2c1   : > { %v1107_v30 = vpop.xlane.xlu0 %1106 }
 0x2c2   : > { %v1111_v31 = vsub.f32 %v1076_v26, %v1107_v30 }
 0x2c4   : > { %v1113_v32 = vmul.f32 1.442695, %v1111_v31 }
 0x2c6   : > { %2709 = vpow2.f32 %v1113_v32 }
 0x2c9   : > { %v1110_v33 = vpop.xlane.xlu2 %1109 }
 0x2ca   : > { %v1112_v34 = vsub.f32 %v1102_v28, %v1110_v33 }
 0x2cc   : > { %v2710_v35 = vpop.eup %2709  ;;  %v1115_v36 = vmul.f32 1.442695, %v1112_v34 }
 0x2cd   : > { %v1117_v37 = vsel %vm1052_vm9, %v2710_v35, 0.0 }
 0x2ce   : > { %2711 = vpow2.f32 %v1115_v36  ;;  %1118 = vadd.xlane.f32.xlu1 %v1117_v37  ;;  %v2578_v36 = vld [vmem:[%s3378_s9 + $0x58] sm:$0xff]  ;;  %v2577_v37 = vld [vmem:[%s3378_s9 + $0x50] sm:$0xff] }
 0x2d4   : > { %v2712_v38 = vpop.eup %2711 }
 0x2d5   : > { %v1120_v39 = vsel %vm1052_vm9, %v2712_v38, 0.0 }
 0x2d6   : > { %1121 = vadd.xlane.f32.xlu2 %v1120_v39  ;;  %v2575_v39 = vld [vmem:[%s3378_s9 + $0x40] sm:$0xff] }
 0x341   : > { %v1119_v44 = vpop.xlane.xlu1 %1118 }
 0x342   : > { %2713 = vrcp.f32 %v1119_v44  ;;  %v1134_v49 = vand.u32 2147483648, %v1119_v44  ;;  %v1132_v51 = vand.u32 2147483647, %v1119_v44  ;;  %vm1128_vm11 = vweird.f32 %v1119_v44 }
 0x344   : > { %v1135_v54 = vor.u32 1.1754944e-38, %v1134_v49  ;;  %vm1133_vm13 = vcmp.eq.f32.partialorder %v1132_v51, 8.507059e+37 }
 0x348   : > { %v2714_v45 = vpop.eup %2713 }
 0x349   : > { %v1124_v46 = vmul.f32 %v2714_v45, %v1119_v44  ;;  %v1122_v47 = vpop.xlane.xlu2 %1121  ;;  %vm1129_vm10 = vweird.f32 %v2714_v45  ;;  %v2582_v44 = vld [vmem:[%s2956_s18 + $0x40] sm:$0xff] }
 0x34a   : > { %2715 = vrcp.f32 %v1122_v47  ;;  %vm1130_vm12 = vmor %vm1128_vm11, %vm1129_vm10  ;;  %v1149_v60 = vand.u32 2147483648, %v1122_v47  ;;  %v1147_v62 = vand.u32 2147483647, %v1122_v47  ;;  %vm1143_vm15 = vweird.f32 %v1122_v47 }
 0x34b   : > { %v1125_v48 = vsub.f32 1.0, %v1124_v46 }
 0x34c   : > { %v1150_v0 = vor.u32 1.1754944e-38, %v1149_v60  ;;  %vm1148_vm2 = vcmp.eq.f32.partialorder %v1147_v62, 8.507059e+37 }
 0x34d   : > { %v1126_v50 = vmul.f32 %v2714_v45, %v1125_v48 }
 0x34f   : > { %v1127_v52 = vadd.f32 %v2714_v45, %v1126_v50 }
 0x350   : > { %v2716_v53 = vpop.eup %2715 }
 0x351   : > { %v1131_v55 = vsel %vm1130_vm12, %v2714_v45, %v1127_v52  ;;  %v1139_v56 = vmul.f32 %v2716_v53, %v1122_v47  ;;  %vm1144_vm14 = vweird.f32 %v2716_v53 }
 0x352   : > { %v1136_v57 = vsel %vm1133_vm13, %v1135_v54, %v1131_v55  ;;  %vm1145_vm0 = vmor %vm1143_vm15, %vm1144_vm14 }
 0x353   : > { %v1140_v58 = vsub.f32 1.0, %v1139_v56  ;;  %v1137_v59 = vmul.f32 %v2710_v35, %v1136_v57 }
 0x355   : > { %v1141_v61 = vmul.f32 %v2716_v53, %v1140_v58  ;;  %2541 = vmatmul.msk.f32.vlgmr.msra.gmra.mxu3 %vm1052_vm9, %v1137_v59 }
 0x357   : > { %v1142_v63 = vadd.f32 %v2716_v53, %v1141_v61 }
 0x359   : > { %v1146_v3 = vsel %vm1145_vm0, %v2716_v53, %v1142_v63 }
 0x35a   : > { %v1151_v4 = vsel %vm1148_vm2, %v1150_v0, %v1146_v3 }
 0x35b   : > { %v1152_v5 = vmul.f32 %v2712_v38, %v1151_v4  ;;  %v2576_v38 = vld [vmem:[%s3378_s9 + $0x48] sm:$0xff] }
 0x35d   : > { %2542 = vmatmul.msk.f32.vlgmr.msrb.gmra.mxu0 %vm1052_vm9, %v1152_v5  ;;  %2562 = vmatmul.msk.f32.vlgmr.msrb.gmra.mxu3 %vm891_vm1, %v3071_v1  ;;  %v2570_v5 = vld [vmem:[%s2986_s26 + $0x8] sm:$0xff] }
 0x35e   : > { %2566 = vmatpush.xpose.msk.msrb.mxu0 %vm1052_vm9, %v1264_v7  ;;  %1468 = vmatpush.msra.mxu3 %v2570_v5  ;;  %v2592_v7 = vld [vmem:[%s2961_s3 + $0x58] sm:$0xff] }
 0x360   : > { %1593 = vmatpush.msrb.mxu3 %v2592_v7 }
 0x362   : > { %1594 = vmatpush.msrb.mxu3 %v2591_v8 }
 0x364   : > { %1595 = vmatpush.msrb.mxu3 %v2590_v9 }
 0x365   : > { %2563 = vmatmul.msk.f32.gmra.mxu3 %vm891_vm1, %v3080_v6  ;;  %2565 = vmatmul.msk.f32.vlgmr.msra.gmra.mxu0 %vm1052_vm9, %v1228_v10  ;;  %v2589_v10 = vld [vmem:[%s2961_s3 + $0x40] sm:$0xff] }
 0x366   : > { %1497 = vmatpush.msra.mxu0 %v1199_v14  ;;  %1596 = vmatpush.msrb.mxu3 %v2589_v10  ;;  %v2614_v14 = vld [vmem:[%s2956_s18 + $0x70] sm:$0xff] }
 0x36d   : > { %2567 = vmatmul.msk.f32.vlgmr.msrb.gmra.mxu0 %vm1052_vm9, %v1231_v13 }
 0x3d8   : > { %v1173_v15 = vpop.f32.mrf.mxu3 }
 0x3d9   : > { %2573 = vmatmul.msk.f32.vlgmr.msra.gmra.mxu0 %vm1052_vm9, %v1173_v15  ;;  %v2613_v15 = vld [vmem:[%s2956_s18 + $0x68] sm:$0xff] }
 0x3da   : > { %v1196_v16 = vpop.f32.mrf.mxu0 }
 0x3e0   : > { %v1293_v18 = vpop.f32.mrf.mxu3 }
 0x3e1   : > { %v1294_v19 = vadd.f32 %v2691_v17, %v1293_v18  ;;  %2574 = vmatmul.msk.f32.gmra.mxu0 %vm1052_vm9, %v1196_v16  ;;  %v2612_v16 = vld [vmem:[%s2956_s18 + $0x60] sm:$0xff] }
 0x3e2   : > { %v1322_v20 = vpop.f32.mrf.mxu0  ;;  %v2693_v18 = vld [vmem:[%s2971_s19 + $0x2] ss:$0 sm:$0xff] }
 0x3e3   : > { %1417 = vmatpush.msra.mxu1 %v1294_v19  ;;  %v1351_v21 = vsel %vm1052_vm9, %v1322_v20, -inf }
 0x3e4   : > { %1352 = vmax.xlane.f32.xlu0 %v1351_v21 }
 0x3e5   : > { %1527 = vmatpush.msrb.mxu1 %v2578_v36 }
 0x3e7   : > { %1528 = vmatpush.msrb.mxu1 %v2577_v37 }
 0x3e8   : > { %v1296_v22 = vpop.f32.mrf.mxu3 }
 0x3e9   : > { %v1297_v23 = vadd.f32 %v2691_v17, %v1296_v22  ;;  %1529 = vmatpush.msrb.mxu1 %v2576_v38 }
 0x3ea   : > { %v1348_v24 = vpop.f32.mrf.mxu0 }
 0x3eb   : > { %1440 = vmatpush.msra.mxu2 %v1297_v23  ;;  %v1354_v25 = vsel %vm1052_vm9, %v1348_v24, -inf  ;;  %1530 = vmatpush.msrb.mxu1 %v2575_v39 }
 0x3ec   : > { %1355 = vmax.xlane.f32.xlu2 %v1354_v25 }
 0x3ed   : > { %1560 = vmatpush.msrb.mxu2 %v2585_v40 }
 0x3ef   : > { %1561 = vmatpush.msrb.mxu2 %v2584_v41 }
 0x3f1   : > { %1562 = vmatpush.msrb.mxu2 %v2583_v42 }
 0x3f3   : > { %1563 = vmatpush.msrb.mxu2 %v2582_v44 }
 0x457   : > { %v1353_v26 = vpop.xlane.xlu0 %1352 }
 0x458   : > { %v1357_v27 = vsub.f32 %v1322_v20, %v1353_v26  ;;  %v2692_v20 = vld [vmem:[%s2966_s28 + $0x2] ss:$0 sm:$0xff] }
 0x45a   : > { %v1359_v28 = vmul.f32 1.442695, %v1357_v27 }
 0x45c   : > { %2717 = vpow2.f32 %v1359_v28  ;;  %v3178_v28 = vpop.f32.mrf.mxu0 }
 0x45f   : > { %v1356_v29 = vpop.xlane.xlu2 %1355 }
 0x460   : > { %v1358_v30 = vsub.f32 %v1348_v24, %v1356_v29 }
 0x462   : > { %v2718_v31 = vpop.eup %2717  ;;  %v1361_v32 = vmul.f32 1.442695, %v1358_v30  ;;  %v2602_v30 = vld [vmem:[%s2986_s26 + $0x10] sm:$0xff] }
 0x463   : > { %v1363_v33 = vsel %vm1052_vm9, %v2718_v31, 0.0 }
 0x464   : > { %2719 = vpow2.f32 %v1361_v32  ;;  %1364 = vadd.xlane.f32.xlu2 %v1363_v33 }
 0x46a   : > { %v2720_v34 = vpop.eup %2719 }
 0x46b   : > { %v1366_v35 = vsel %vm1052_vm9, %v2720_v34, 0.0 }
 0x46c   : > { %1367 = vadd.xlane.f32.xlu1 %v1366_v35 }
 0x4d7   : > { %v1365_v43 = vpop.xlane.xlu2 %1364 }
 0x4d8   : > { %2721 = vrcp.f32 %v1365_v43  ;;  %v1380_v49 = vand.u32 2147483648, %v1365_v43  ;;  %v1378_v51 = vand.u32 2147483647, %v1365_v43  ;;  %vm1374_vm4 = vweird.f32 %v1365_v43 }
 0x4da   : > { %v1381_v54 = vor.u32 1.1754944e-38, %v1380_v49  ;;  %vm1379_vm6 = vcmp.eq.f32.partialorder %v1378_v51, 8.507059e+37 }
 0x4de   : > { %v2722_v45 = vpop.eup %2721 }
 0x4df   : > { %v1370_v46 = vmul.f32 %v2722_v45, %v1365_v43  ;;  %v1368_v47 = vpop.xlane.xlu1 %1367  ;;  %vm1375_vm3 = vweird.f32 %v2722_v45  ;;  %v2695_v43 = vld [vmem:[%s2971_s19 + $0x3] ss:$0 sm:$0xff] }
 0x4e0   : > { %2723 = vrcp.f32 %v1368_v47  ;;  %vm1376_vm5 = vmor %vm1374_vm4, %vm1375_vm3  ;;  %v1395_v60 = vand.u32 2147483648, %v1368_v47  ;;  %v1393_v62 = vand.u32 2147483647, %v1368_v47  ;;  %vm1389_vm8 = vweird.f32 %v1368_v47 }
 0x4e1   : > { %v1371_v48 = vsub.f32 1.0, %v1370_v46 }
 0x4e2   : > { %v1396_v0 = vor.u32 1.1754944e-38, %v1395_v60  ;;  %vm1394_vm11 = vcmp.eq.f32.partialorder %v1393_v62, 8.507059e+37  ;;  %v2622_v60 = vld [vmem:[%s2961_s3 + $0x78] sm:$0xff]  ;;  %v2620_v62 = vld [vmem:[%s2961_s3 + $0x68] sm:$0xff] }
 0x4e3   : > { %v1372_v50 = vmul.f32 %v2722_v45, %v1371_v48 }
 0x4e5   : > { %v1373_v52 = vadd.f32 %v2722_v45, %v1372_v50 }
 0x4e6   : > { %v2724_v53 = vpop.eup %2723 }
 0x4e7   : > { %v1377_v55 = vsel %vm1376_vm5, %v2722_v45, %v1373_v52  ;;  %v1385_v56 = vmul.f32 %v2724_v53, %v1368_v47  ;;  %vm1390_vm7 = vweird.f32 %v2724_v53 }
 0x4e8   : > { %v1382_v57 = vsel %vm1379_vm6, %v1381_v54, %v1377_v55  ;;  %vm1391_vm10 = vmor %vm1389_vm8, %vm1390_vm7 }
 0x4e9   : > { %v1386_v58 = vsub.f32 1.0, %v1385_v56  ;;  %v1383_v59 = vmul.f32 %v2718_v31, %v1382_v57  ;;  %v1502_v31 = vpop.f32.mrf.mxu0  ;;  %v2608_v56 = vld [vmem:[%s3378_s9 + $0x78] sm:$0xff]  ;;  %v2607_v57 = vld [vmem:[%s3378_s9 + $0x70] sm:$0xff] }
 0x4eb   : > { %v1387_v61 = vmul.f32 %v2724_v53, %v1386_v58  ;;  %2568 = vmatmul.msk.f32.vlgmr.msra.gmra.mxu1 %vm1052_vm9, %v1383_v59  ;;  %v2606_v58 = vld [vmem:[%s3378_s9 + $0x68] sm:$0xff]  ;;  %v2605_v59 = vld [vmem:[%s3378_s9 + $0x60] sm:$0xff] }
 0x4ed   : > { %v1388_v63 = vadd.f32 %v2724_v53, %v1387_v61  ;;  %v2621_v61 = vld [vmem:[%s2961_s3 + $0x70] sm:$0xff] }
 0x4ef   : > { %v1392_v2 = vsel %vm1391_vm10, %v2724_v53, %v1388_v63 }
 0x4f0   : > { %v1397_v3 = vsel %vm1394_vm11, %v1396_v0, %v1392_v2  ;;  %v2619_v0 = vld [vmem:[%s2961_s3 + $0x60] sm:$0xff]  ;;  %s3383_s3 = sld [smem:[#allocation19_spill]] }
 0x4f1   : > { %v1398_v4 = vmul.f32 %v2720_v34, %v1397_v3  ;;  %v2694_v34 = vld [vmem:[%s2976_s20 + $0x2] ss:$0 sm:$0xff] }
 0x4f3   : > { %2569 = vmatmul.msk.f32.vlgmr.msra.gmra.mxu2 %vm1052_vm9, %v1398_v4  ;;  %2580 = vmatmul.msk.f32.vlgmr.msrb.gmra.mxu1 %vm891_vm1, %v3071_v1 }
 0x4f6   : > { %s3384_s19 = scalar_lea.vmem %s3383_s3, %s2936_s22  ;;  %s3385_s22 = sld [smem:[#allocation20_spill]] (!%p2639_p6) }
 0x4fb   : > { %2581 = vmatmul.msk.f32.gmra.mxu1 %vm891_vm1, %v3080_v6  ;;  %2587 = vmatmul.msk.f32.vlgmr.msrb.gmra.mxu2 %vm891_vm1, %v3071_v1 }
 0x503   : > { %2588 = vmatmul.msk.f32.gmra.mxu2 %vm891_vm1, %v3080_v6 }
 0x568   : > { %v1419_v13 = vpop.f32.mrf.mxu1 }
 0x569   : > { %2571 = vmatmul.msk.f32.vlgmr.msra.gmra.mxu3 %vm1052_vm9, %v1419_v13 }
 0x56a   : > { %1838 = vmatpush.msra.mxu3 %v2615_v11 }
 0x56c   : > { %1839 = vmatpush.msra.mxu3 %v2614_v14 }
 0x56e   : > { %1840 = vmatpush.msra.mxu3 %v2613_v15 }
 0x570   : > { %1841 = vmatpush.msra.mxu3 %v2612_v16  ;;  %v1532_v19 = vpop.f32.mrf.mxu1 }
 0x571   : > { %v1533_v23 = vadd.f32 %v2692_v20, %v1532_v19 }
 0x576   : > { %v1442_v17 = vpop.f32.mrf.mxu2 }
 0x577   : > { %2572 = vmatmul.msk.f32.gmra.mxu3 %vm1052_vm9, %v1442_v17 }
 0x578   : > { %v1535_v25 = vpop.f32.mrf.mxu1 }
 0x579   : > { %v1536_v27 = vadd.f32 %v2692_v20, %v1535_v25 }
 0x57e   : > { %v1565_v21 = vpop.f32.mrf.mxu2 }
 0x57f   : > { %v1566_v22 = vadd.f32 %v2693_v18, %v1565_v21  ;;  %2594 = vmatmul.msk.f32.vlgmr.msrb.gmra.mxu3 %vm891_vm1, %v3071_v1 }
 0x581   : > { %2596 = vmatpush.xpose.msk.msrb.mxu0 %vm1052_vm9, %v1566_v22 }
 0x584   : > { %2597 = vmatmul.msk.f32.vlgmr.msrb.gmra.mxu0 %vm1052_vm9, %v1533_v23 }
 0x586   : > { %v1568_v24 = vpop.f32.mrf.mxu2 }
 0x587   : > { %v1569_v26 = vadd.f32 %v2693_v18, %v1568_v24  ;;  %2595 = vmatmul.msk.f32.gmra.mxu3 %vm891_vm1, %v3080_v6 }
 0x589   : > { %2598 = vmatpush.xpose.msk.msra.mxu1 %vm1052_vm9, %v1569_v26 }
 0x58c   : > { %2599 = vmatmul.msk.f32.vlgmr.msra.gmra.mxu1 %vm1052_vm9, %v1536_v27 }
 0x58d   : > { %1773 = vmatpush.msrb.mxu1 %v2602_v30 }
 0x58f   : > { %2617 = vmatmul.msk.f32.vlgmr.msra.gmra.mxu3 %vm891_vm1, %v3071_v1 }
 0x597   : > { %2618 = vmatmul.msk.f32.gmra.mxu3 %vm891_vm1, %v3080_v6 }
 0x5ec   : > { %v3180_v29 = vpop.f32.mrf.mxu3 }
 0x5fa   : > { %v1473_v32 = vpop.f32.mrf.mxu3 }
 0x5fb   : > { %v3183_v33 = vadd.f32 %v1502_v31, %v1473_v32 }
 0x601   : > { %v1627_v35 = vpop.f32.mrf.mxu0 }
 0x602   : > { %v1598_v36 = vpop.f32.mrf.mxu3  ;;  %v1656_v37 = vsel %vm1052_vm9, %v1627_v35, -inf }
 0x603   : > { %v1599_v38 = vadd.f32 %v2694_v34, %v1598_v36  ;;  %1657 = vmax.xlane.f32.xlu0 %v1656_v37  ;;  %v2696_v37 = vld [vmem:[%s2966_s28 + $0x3] ss:$0 sm:$0xff] }
 0x605   : > { %1722 = vmatpush.msra.mxu2 %v1599_v38 }
 0x607   : > { %1805 = vmatpush.msrb.mxu2 %v2608_v56 }
 0x609   : > { %v1653_v39 = vpop.f32.mrf.mxu1  ;;  %1806 = vmatpush.msrb.mxu2 %v2607_v57 }
 0x60a   : > { %v1601_v40 = vpop.f32.mrf.mxu3  ;;  %v1659_v41 = vsel %vm1052_vm9, %v1653_v39, -inf }
 0x60b   : > { %v1602_v42 = vadd.f32 %v2694_v34, %v1601_v40  ;;  %1660 = vmax.xlane.f32.xlu1 %v1659_v41  ;;  %1807 = vmatpush.msrb.mxu2 %v2606_v58  ;;  %v2697_v34 = vld [vmem:[%s2976_s20 + $0x3] ss:$0 sm:$0xff] }
 0x60d   : > { %1745 = vmatpush.msra.mxu0 %v1602_v42  ;;  %1808 = vmatpush.msrb.mxu2 %v2605_v59 }
 0x60f   : > { %1871 = vmatpush.msrb.mxu0 %v2622_v60 }
 0x611   : > { %1872 = vmatpush.msrb.mxu0 %v2621_v61 }
 0x612   : > { %v1843_v44 = vpop.f32.mrf.mxu3 }
 0x613   : > { %v1844_v45 = vadd.f32 %v2695_v43, %v1843_v44  ;;  %1873 = vmatpush.msrb.mxu0 %v2620_v62 }
 0x615   : > { %2626 = vmatpush.xpose.msk.msra.mxu1 %vm1052_vm9, %v1844_v45  ;;  %1874 = vmatpush.msrb.mxu0 %v2619_v0 }
 0x61a   : > { %v1846_v14 = vpop.f32.mrf.mxu3 }
 0x61b   : > { %v1847_v20 = vadd.f32 %v2695_v43, %v1846_v14 }
 0x676   : > { %v1658_v46 = vpop.xlane.xlu0 %1657 }
 0x677   : > { %v1662_v47 = vsub.f32 %v1627_v35, %v1658_v46 }
 0x679   : > { %v1664_v48 = vmul.f32 1.442695, %v1662_v47 }
 0x67b   : > { %2725 = vpow2.f32 %v1664_v48 }
 0x67e   : > { %v1661_v49 = vpop.xlane.xlu1 %1660 }
 0x67f   : > { %v1663_v50 = vsub.f32 %v1653_v39, %v1661_v49 }
 0x681   : > { %v2726_v51 = vpop.eup %2725  ;;  %v1666_v52 = vmul.f32 1.442695, %v1663_v50 }
 0x682   : > { %v1668_v53 = vsel %vm1052_vm9, %v2726_v51, 0.0 }
 0x683   : > { %2727 = vpow2.f32 %v1666_v52  ;;  %1669 = vadd.xlane.f32.xlu2 %v1668_v53 }
 0x689   : > { %v2728_v54 = vpop.eup %2727 }
 0x68a   : > { %v1671_v55 = vsel %vm1052_vm9, %v2728_v54, 0.0 }
 0x68b   : > { %1672 = vadd.xlane.f32.xlu0 %v1671_v55 }
 0x6f6   : > { %v1670_v63 = vpop.xlane.xlu2 %1669 }
 0x6f7   : > { %2729 = vrcp.f32 %v1670_v63  ;;  %v1685_v7 = vand.u32 2147483648, %v1670_v63  ;;  %v1683_v9 = vand.u32 2147483647, %v1670_v63  ;;  %vm1679_vm13 = vweird.f32 %v1670_v63 }
 0x6f9   : > { %v1686_v13 = vor.u32 1.1754944e-38, %v1685_v7  ;;  %vm1684_vm15 = vcmp.eq.f32.partialorder %v1683_v9, 8.507059e+37 }
 0x6fd   : > { %v2730_v2 = vpop.eup %2729 }
 0x6fe   : > { %v1675_v3 = vmul.f32 %v2730_v2, %v1670_v63  ;;  %v1673_v4 = vpop.xlane.xlu0 %1672  ;;  %vm1680_vm12 = vweird.f32 %v2730_v2 }
 0x6ff   : > { %2731 = vrcp.f32 %v1673_v4  ;;  %vm1681_vm14 = vmor %vm1679_vm13, %vm1680_vm12  ;;  %v1700_v21 = vand.u32 2147483648, %v1673_v4  ;;  %v1698_v23 = vand.u32 2147483647, %v1673_v4  ;;  %vm1694_vm2 = vweird.f32 %v1673_v4 }
 0x700   : > { %v1676_v5 = vsub.f32 1.0, %v1675_v3 }
 0x701   : > { %v1701_v25 = vor.u32 1.1754944e-38, %v1700_v21  ;;  %vm1699_vm4 = vcmp.eq.f32.partialorder %v1698_v23, 8.507059e+37  ;;  %v2632_v21 = vld [vmem:[%s2986_s26 + $0x18] sm:$0xff] }
 0x702   : > { %v1677_v8 = vmul.f32 %v2730_v2, %v1676_v5 }
 0x704   : > { %v1678_v10 = vadd.f32 %v2730_v2, %v1677_v8 }
 0x705   : > { %v2732_v11 = vpop.eup %2731 }
 0x706   : > { %v1682_v15 = vsel %vm1681_vm14, %v2730_v2, %v1678_v10  ;;  %v1690_v16 = vmul.f32 %v2732_v11, %v1673_v4  ;;  %vm1695_vm0 = vweird.f32 %v2732_v11 }
 0x707   : > { %v1687_v17 = vsel %vm1684_vm15, %v1686_v13, %v1682_v15  ;;  %vm1696_vm3 = vmor %vm1694_vm2, %vm1695_vm0 }
 0x708   : > { %v1691_v18 = vsub.f32 1.0, %v1690_v16  ;;  %v1688_v19 = vmul.f32 %v2726_v51, %v1687_v17 }
 0x70a   : > { %v1692_v22 = vmul.f32 %v2732_v11, %v1691_v18  ;;  %2600 = vmatmul.msk.f32.vlgmr.msra.gmra.mxu2 %vm1052_vm9, %v1688_v19 }
 0x70b   : > { %2628 = vmatpush.xpose.msk.msra.mxu2 %vm1052_vm9, %v1847_v20 }
 0x70c   : > { %v1693_v24 = vadd.f32 %v2732_v11, %v1692_v22 }
 0x70e   : > { %v1697_v26 = vsel %vm1696_vm3, %v2732_v11, %v1693_v24  ;;  %v2698_v24 = vld [vmem:[%s3384_s19] ss:$0 sm:$0xff] }
 0x70f   : > { %v1702_v27 = vsel %vm1699_vm4, %v1701_v25, %v1697_v26  ;;  %vm2176_vm4 = vcmask 523264  }
 0x710   : > { %v1703_v30 = vmul.f32 %v2728_v54, %v1702_v27 }
 0x712   : > { %2601 = vmatmul.msk.f32.vlgmr.msra.gmra.mxu0 %vm1052_vm9, %v1703_v30  ;;  %2610 = vmatmul.msk.f32.vlgmr.msrb.gmra.mxu2 %vm891_vm1, %v3071_v1  ;;  %v2745_v30 = vld [vmem:[#allocation2] sm:$0xff] }
 0x71a   : > { %2611 = vmatmul.msk.f32.gmra.mxu2 %vm891_vm1, %v3080_v6  ;;  %2624 = vmatmul.msk.f32.vlgmr.msrb.gmra.mxu0 %vm891_vm1, %v3071_v1 }
 0x722   : > { %2625 = vmatmul.msk.f32.gmra.mxu0 %vm891_vm1, %v3080_v6  ;;  %v1500_v6 = vadd.f32 %v3178_v28, %v3180_v29 }
 0x78d   : > { %v1724_v31 = vpop.f32.mrf.mxu2 }
 0x78e   : > { %2603 = vmatmul.msk.f32.vlgmr.msrb.gmra.mxu1 %vm1052_vm9, %v1724_v31 }
 0x78f   : > { %v1747_v32 = vpop.f32.mrf.mxu0  ;;  %2051 = vmatpush.msrb.mxu1 %v2632_v21  ;;  %v2166_v21 = vld [vmem:[%s3009_s10 + $0x10] sm:$0xff] }
 0x795   : > { %v1810_v35 = vpop.f32.mrf.mxu2 }
 0x796   : > { %2604 = vmatmul.msk.f32.gmra.mxu1 %vm1052_vm9, %v1747_v32  ;;  %v1811_v39 = vadd.f32 %v2696_v37, %v1810_v35 }
 0x797   : > { %v1876_v36 = vpop.f32.mrf.mxu0 }
 0x798   : > { %v1877_v38 = vadd.f32 %v2697_v34, %v1876_v36 }
 0x79a   : > { %2000 = vmatpush.msra.mxu0 %v1877_v38 }
 0x79d   : > { %v1813_v40 = vpop.f32.mrf.mxu2 }
 0x79e   : > { %v1814_v41 = vadd.f32 %v2696_v37, %v1813_v40  ;;  %2627 = vmatmul.msk.f32.vlgmr.msra.gmra.mxu1 %vm1052_vm9, %v1811_v39  ;;  %v2746_v37 = vld [vmem:[#allocation2 + $0x8] sm:$0xff] }
 0x79f   : > { %v1879_v1 = vpop.f32.mrf.mxu0 }
 0x7a0   : > { %v1880_v42 = vadd.f32 %v2697_v34, %v1879_v1  ;;  %2629 = vmatmul.msk.f32.vlgmr.msra.gmra.mxu2 %vm1052_vm9, %v1814_v41 }
 0x7a2   : > { %2023 = vmatpush.msrb.mxu0 %v1880_v42 }
 0x80b   : > { %v1775_v43 = vpop.f32.mrf.mxu1 }
 0x80c   : > { %v3219_v44 = vadd.f32 %v1775_v43, %v1500_v6 }
 0x813   : > { %v1778_v45 = vpop.f32.mrf.mxu1 }
 0x814   : > { %v3222_v46 = vadd.f32 %v1778_v45, %v3183_v33 }
 0x81b   : > { %v1905_v47 = vpop.f32.mrf.mxu1 }
 0x81c   : > { %v1934_v48 = vsel %vm1052_vm9, %v1905_v47, -inf }
 0x81d   : > { %1935 = vmax.xlane.f32.xlu1 %v1934_v48  ;;  %v2128_v48 = vld [vmem:[%s2999_s8 + $0x18] sm:$0xff] }
 0x81e   : > { %2151 = vmatpush.msrb.mxu2 %v2128_v48 }
 0x823   : > { %v1931_v49 = vpop.f32.mrf.mxu2 }
 0x824   : > { %v1937_v50 = vsel %vm1052_vm9, %v1931_v49, -inf }
 0x825   : > { %1938 = vmax.xlane.f32.xlu2 %v1937_v50  ;;  %v2126_v50 = vld [vmem:[%s2999_s8 + $0x8] sm:$0xff] }
 0x890   : > { %v1936_v51 = vpop.xlane.xlu1 %1935 }
 0x891   : > { %v1940_v52 = vsub.f32 %v1905_v47, %v1936_v51  ;;  %v2125_v51 = vld [vmem:[%s2999_s8] sm:$0xff] }
 0x893   : > { %v1942_v53 = vmul.f32 1.442695, %v1940_v52 }
 0x895   : > { %2733 = vpow2.f32 %v1942_v53 }
 0x898   : > { %v1939_v28 = vpop.xlane.xlu2 %1938 }
 0x899   : > { %v1941_v29 = vsub.f32 %v1931_v49, %v1939_v28  ;;  %v2127_v49 = vld [vmem:[%s2999_s8 + $0x10] sm:$0xff] }
 0x89a   : > { %2152 = vmatpush.msrb.mxu2 %v2127_v49 }
 0x89b   : > { %v2734_v54 = vpop.eup %2733  ;;  %v1944_v55 = vmul.f32 1.442695, %v1941_v29  ;;  %v2171_v29 = vld [vmem:[%s3009_s10 + $0x38] sm:$0xff] }
 0x89c   : > { %v1946_v56 = vsel %vm1052_vm9, %v2734_v54, 0.0  ;;  %2153 = vmatpush.msrb.mxu2 %v2126_v50  ;;  %2191 = vmatpush.msrb.mxu3 %v2171_v29 }
 0x89d   : > { %2735 = vpow2.f32 %v1944_v55  ;;  %1947 = vadd.xlane.f32.xlu0 %v1946_v56  ;;  %v2169_v55 = vld [vmem:[%s3009_s10 + $0x28] sm:$0xff] }
 0x89e   : > { %2154 = vmatpush.msrb.mxu2 %v2125_v51 }
 0x8a3   : > { %v2736_v33 = vpop.eup %2735 }
 0x8a4   : > { %v1949_v57 = vsel %vm1052_vm9, %v2736_v33, 0.0 }
 0x8a5   : > { %1950 = vadd.xlane.f32.xlu1 %v1949_v57  ;;  %v2168_v57 = vld [vmem:[%s3009_s10 + $0x20] sm:$0xff] }
 0x910   : > { %v1948_v58 = vpop.xlane.xlu0 %1947 }
 0x911   : > { %2737 = vrcp.f32 %v1948_v58  ;;  %v1963_v63 = vand.u32 2147483648, %v1948_v58  ;;  %v1961_v2 = vand.u32 2147483647, %v1948_v58  ;;  %vm1957_vm6 = vweird.f32 %v1948_v58 }
 0x913   : > { %v1964_v5 = vor.u32 1.1754944e-38, %v1963_v63  ;;  %vm1962_vm8 = vcmp.eq.f32.partialorder %v1961_v2, 8.507059e+37 }
 0x917   : > { %v2738_v59 = vpop.eup %2737 }
 0x918   : > { %v1953_v60 = vmul.f32 %v2738_v59, %v1948_v58  ;;  %v1951_v61 = vpop.xlane.xlu1 %1950  ;;  %vm1958_vm5 = vweird.f32 %v2738_v59 }
 0x919   : > { %2739 = vrcp.f32 %v1951_v61  ;;  %vm1959_vm7 = vmor %vm1957_vm6, %vm1958_vm5  ;;  %v1978_v13 = vand.u32 2147483648, %v1951_v61  ;;  %v1976_v15 = vand.u32 2147483647, %v1951_v61  ;;  %vm1972_vm11 = vweird.f32 %v1951_v61 }
 0x91a   : > { %v1954_v62 = vsub.f32 1.0, %v1953_v60  ;;  %v2167_v60 = vld [vmem:[%s3009_s10 + $0x18] sm:$0xff] }
 0x91b   : > { %v1979_v17 = vor.u32 1.1754944e-38, %v1978_v13  ;;  %vm1977_vm13 = vcmp.eq.f32.partialorder %v1976_v15, 8.507059e+37 }
 0x91c   : > { %v1955_v0 = vmul.f32 %v2738_v59, %v1954_v62 }
 0x91e   : > { %v1956_v3 = vadd.f32 %v2738_v59, %v1955_v0 }
 0x91f   : > { %v2740_v4 = vpop.eup %2739 }
 0x920   : > { %v1960_v7 = vsel %vm1959_vm7, %v2738_v59, %v1956_v3  ;;  %v1968_v8 = vmul.f32 %v2740_v4, %v1951_v61  ;;  %vm1973_vm10 = vweird.f32 %v2740_v4 }
 0x921   : > { %v1965_v9 = vsel %vm1962_vm8, %v1964_v5, %v1960_v7  ;;  %vm1974_vm12 = vmor %vm1972_vm11, %vm1973_vm10  ;;  %v2699_v5 = vld [vmem:[%s857_s17] ss:$0 sm:$0xff] }
 0x922   : > { %v1969_v10 = vsub.f32 1.0, %v1968_v8  ;;  %v1966_v11 = vmul.f32 %v2734_v54, %v1965_v9  ;;  %v2170_v54 = vld [vmem:[%s3009_s10 + $0x30] sm:$0xff] }
 0x923   : > { %2192 = vmatpush.msrb.mxu3 %v2170_v54 }
 0x924   : > { %v1970_v14 = vmul.f32 %v2740_v4, %v1969_v10  ;;  %2630 = vmatmul.msk.f32.vlgmr.msra.gmra.mxu0 %vm1052_vm9, %v1966_v11  ;;  %v2700_v10 = vld [vmem:[%s860_s2] ss:$0 sm:$0xff] }
 0x925   : > { %2193 = vmatpush.msrb.mxu3 %v2169_v55 }
 0x926   : > { %v1971_v16 = vadd.f32 %v2740_v4, %v1970_v14 }
 0x927   : > { %2194 = vmatpush.msrb.mxu3 %v2168_v57 }
 0x928   : > { %v1975_v18 = vsel %vm1974_vm12, %v2740_v4, %v1971_v16 }
 0x929   : > { %v1980_v19 = vsel %vm1977_vm13, %v1979_v17, %v1975_v18  ;;  %2195 = vmatpush.msrb.mxu3 %v2167_v60 }
 0x92a   : > { %v1981_v20 = vmul.f32 %v2736_v33, %v1980_v19 }
 0x92b   : > { %2196 = vmatpush.msrb.mxu3 %v2166_v21 }
 0x92c   : > { %2631 = vmatmul.msk.f32.vlgmr.msrb.gmra.mxu0 %vm1052_vm9, %v1981_v20 }
 0x9a1   : > { %v2002_v22 = vpop.f32.mrf.mxu0 }
 0x9a2   : > { %2633 = vmatmul.msk.f32.vlgmr.msrb.gmra.mxu1 %vm1052_vm9, %v2002_v22  ;;  %v2165_v22 = vld [vmem:[%s3009_s10 + $0x8] sm:$0xff] }
 0x9a3   : > { %2197 = vmatpush.msrb.mxu3 %v2165_v22 }
 0x9a9   : > { %v2025_v23 = vpop.f32.mrf.mxu0 }
 0x9aa   : > { %2634 = vmatmul.msk.f32.gmra.mxu1 %vm1052_vm9, %v2025_v23  ;;  %v2164_v23 = vld [vmem:[%s3009_s10] sm:$0xff] }
 0x9ab   : > { %2198 = vmatpush.msrb.mxu3 %v2164_v23 }
 0xa1f   : > { %v2053_v25 = vpop.f32.mrf.mxu1 }
 0xa20   : > { %v2059_v26 = vadd.f32 %v2053_v25, %v3219_v44 }
 0xa22   : > { %v2065_v27 = vadd.f32 %v2698_v24, %v2059_v26 }
 0xa24   : > { %v3239_v31 = vadd.f32 %v2745_v30, %v2065_v27 }
 0xa26   : > { %v2071_v32 = vsel %vm891_vm1, %v3239_v31, 0.0 }
 0xa27   : > { %2072 = vadd.xlane.f32.xlu2 %v2071_v32  ;;  %v2056_v34 = vpop.f32.mrf.mxu1 }
 0xa28   : > { %v2060_v35 = vadd.f32 %v2056_v34, %v3222_v46 }
 0xa2a   : > { %v2066_v36 = vadd.f32 %v2698_v24, %v2060_v35  ;;  %v2701_v24 = vld [vmem:[%s868_s29] ss:$0 sm:$0xff] }
 0xa2b   : > { %v2702_v35 = vld [vmem:[%s876_s7] ss:$0 sm:$0xff] }
 0xa2c   : > { %v3244_v38 = vadd.f32 %v2746_v37, %v2066_v36 }
 0xa2e   : > { %v2074_v39 = vsel %vm891_vm1, %v3244_v38, 0.0 }
 0xa2f   : > { %2075 = vadd.xlane.f32.xlu0 %v2074_v39 }
 0xa9a   : > { %v2073_v40 = vpop.xlane.xlu2 %2072 }
 0xa9b   : > { %v2077_v41 = vmul.f32 %v2073_v40, %v3024_v12 }
 0xa9d   : > { %v2079_v1 = vsub.f32 %v3239_v31, %v2077_v41 }
 0xa9f   : > { %v2081_v42 = vmul.f32 %v2079_v1, %v2079_v1 }
 0xaa1   : > { %v2083_v6 = vsel %vm891_vm1, %v2081_v42, 0.0 }
 0xaa2   : > { %2084 = vadd.xlane.f32.xlu1 %v2083_v6  ;;  %v2076_v43 = vpop.xlane.xlu0 %2075 }
 0xaa3   : > { %v2078_v44 = vmul.f32 %v2076_v43, %v3024_v12 }
 0xaa5   : > { %v2080_v45 = vsub.f32 %v3244_v38, %v2078_v44 }
 0xaa7   : > { %v2082_v46 = vmul.f32 %v2080_v45, %v2080_v45 }
 0xaa9   : > { %v2086_v47 = vsel %vm891_vm1, %v2082_v46, 0.0 }
 0xaaa   : > { %2087 = vadd.xlane.f32.xlu2 %v2086_v47 }
 0xb15   : > { %v2085_v52 = vpop.xlane.xlu1 %2084 }
 0xb16   : > { %v2089_v53 = vmul.f32 %v2085_v52, %v3024_v12 }
 0xb18   : > { %v2091_v28 = vadd.f32 1e-05, %v2089_v53 }
 0xb1a   : > { %2741 = vrsqrt.f32 %v2091_v28  ;;  %vm2099_vm14 = vweird.f32 %v2091_v28 }
 0xb1d   : > { %v2088_v56 = vpop.xlane.xlu2 %2087 }
 0xb1e   : > { %v2090_v33 = vmul.f32 %v2088_v56, %v3024_v12 }
 0xb20   : > { %v2742_v58 = vpop.eup %2741  ;;  %v2092_v59 = vadd.f32 1e-05, %v2090_v33 }
 0xb21   : > { %v2094_v61 = vmul.f32 %v2742_v58, %v2091_v28  ;;  %vm2100_vm9 = vweird.f32 %v2742_v58 }
 0xb22   : > { %2743 = vrsqrt.f32 %v2092_v59  ;;  %vm2101_vm15 = vmor %vm2099_vm14, %vm2100_vm9  ;;  %vm2109_vm2 = vweird.f32 %v2092_v59 }
 0xb23   : > { %v2095_v62 = vmul.f32 %v2742_v58, %v2094_v61 }
 0xb25   : > { %v2096_v63 = vmul.f32 0.5, %v2095_v62 }
 0xb27   : > { %v2097_v0 = vsub.f32 1.5, %v2096_v63 }
 0xb28   : > { %v2744_v2 = vpop.eup %2743 }
 0xb29   : > { %v2098_v3 = vmul.f32 %v2742_v58, %v2097_v0  ;;  %v2104_v4 = vmul.f32 %v2744_v2, %v2092_v59  ;;  %vm2110_vm0 = vweird.f32 %v2744_v2 }
 0xb2a   : > { %vm2111_vm3 = vmor %vm2109_vm2, %vm2110_vm0 }
 0xb2b   : > { %v2102_v7 = vsel %vm2101_vm15, %v2742_v58, %v2098_v3  ;;  %v2105_v8 = vmul.f32 %v2744_v2, %v2104_v4 }
 0xb2c   : > { %v2113_v9 = vmul.f32 %v2102_v7, %v2079_v1 }
 0xb2d   : > { %v2106_v11 = vmul.f32 0.5, %v2105_v8 }
 0xb2e   : > { %v2118_v13 = vmul.f32 %v2699_v5, %v2113_v9 }
 0xb2f   : > { %v2107_v14 = vsub.f32 1.5, %v2106_v11 }
 0xb30   : > { %v2123_v15 = vadd.f32 %v2700_v10, %v2118_v13 }
 0xb31   : > { %v2108_v16 = vmul.f32 %v2744_v2, %v2107_v14 }
 0xb32   : > { %2635 = vmatmul.msk.f32.vlgmr.msrb.gmra.mxu2 %vm891_vm1, %v2123_v15 }
 0xb33   : > { %v2112_v17 = vsel %vm2111_vm3, %v2744_v2, %v2108_v16 }
 0xb34   : > { %v2114_v18 = vmul.f32 %v2112_v17, %v2080_v45 }
 0xb36   : > { %v2119_v19 = vmul.f32 %v2699_v5, %v2114_v18 }
 0xb38   : > { %v2124_v20 = vadd.f32 %v2700_v10, %v2119_v19 }
 0xb3a   : > { %2636 = vmatmul.msk.f32.gmra.mxu2 %vm891_vm1, %v2124_v20 }
 0xbb5   : > { %v2156_v25 = vpop.f32.mrf.mxu2 }
 0xbb6   : > { %v2157_v26 = vadd.f32 %v2701_v24, %v2156_v25 }
 0xbb8   : > { %v2162_v27 = vmax.f32 %v2157_v26, 0.0 }
 0xbba   : > { %2637 = vmatmul.msk.f32.vlgmr.msrb.gmra.mxu3 %vm2176_vm4, %v2162_v27 }
 0xbbd   : > { %v2159_v30 = vpop.f32.mrf.mxu2 }
 0xbbe   : > { %v2160_v32 = vadd.f32 %v2701_v24, %v2159_v30 }
 0xbc0   : > { %v2163_v34 = vmax.f32 %v2160_v32, 0.0 }
 0xbc2   : > { %2638 = vmatmul.msk.f32.gmra.mxu3 %vm2176_vm4, %v2163_v34 }
 0xc3d   : > { %v2200_v36 = vpop.f32.mrf.mxu3 }
 0xc3e   : > { %v2201_v37 = vadd.f32 %v2702_v35, %v2200_v36 }
 0xc40   : > { %v2206_v39 = vadd.f32 %v2201_v37, %v3239_v31 }
 0xc42   : > { %2208 = vst.msk [vmem:[#allocation2] sm:$0xff] %vm891_vm1, %v2206_v39 }
 0xc45   : > { %v2203_v40 = vpop.f32.mrf.mxu3 }
 0xc46   : > { %v2204_v41 = vadd.f32 %v2702_v35, %v2203_v40  ;;  %2213 = sbr.rel (%p2639_p6) target bundleno = 3424 (0xd60), region = 104 }
 0xc48   : > { %v2207_v1 = vadd.f32 %v2204_v41, %v3244_v38 }
 0xc4a   : > { %2209 = vst.msk [vmem:[#allocation2 + $0x8] sm:$0xff] %vm891_vm1, %v2207_v1 }
 0xc4b   : > { %v2216_v42 = vsel %vm891_vm1, %v2206_v39, 0.0  ;;  %v2219_v6 = vsel %vm891_vm1, %v2207_v1, 0.0  ;;  %v2747_v62 = vld [vmem:[%s3385_s22] ss:$0 sm:$0xff] }
 0xc4c   : > { %2217 = vadd.xlane.f32.xlu0 %v2216_v42  ;;  %v2748_v2 = vld [vmem:[%s3386_s5] ss:$0 sm:$0xff] }
 0xc54   : > { %2220 = vadd.xlane.f32.xlu0 %v2219_v6 }
 0xcbf   : > { %v2218_v43 = vpop.xlane.xlu0 %2217 }
 0xcc0   : > { %v2222_v31 = vmul.f32 %v2218_v43, %v3024_v12 }
 0xcc2   : > { %v2224_v44 = vsub.f32 %v2206_v39, %v2222_v31 }
 0xcc4   : > { %v2226_v45 = vmul.f32 %v2224_v44, %v2224_v44 }
 0xcc6   : > { %v2228_v46 = vsel %vm891_vm1, %v2226_v45, 0.0 }
 0xcc7   : > { %2229 = vadd.xlane.f32.xlu1 %v2228_v46  ;;  %v2221_v38 = vpop.xlane.xlu0 %2220 }
 0xcc8   : > { %v2223_v47 = vmul.f32 %v2221_v38, %v3024_v12 }
 0xcca   : > { %v2225_v48 = vsub.f32 %v2207_v1, %v2223_v47 }
 0xccc   : > { %v2227_v49 = vmul.f32 %v2225_v48, %v2225_v48 }
 0xcce   : > { %v2231_v50 = vsel %vm891_vm1, %v2227_v49, 0.0 }
 0xccf   : > { %2232 = vadd.xlane.f32.xlu1 %v2231_v50 }
 0xd3a   : > { %v2230_v51 = vpop.xlane.xlu1 %2229 }
 0xd3b   : > { %v2234_v52 = vmul.f32 %v2230_v51, %v3024_v12 }
 0xd3d   : > { %v2236_v53 = vadd.f32 1e-05, %v2234_v52 }
 0xd3f   : > { %2749 = vrsqrt.f32 %v2236_v53  ;;  %vm2244_vm6 = vweird.f32 %v2236_v53 }
 0xd42   : > { %v2233_v28 = vpop.xlane.xlu1 %2232 }
 0xd43   : > { %v2235_v29 = vmul.f32 %v2233_v28, %v3024_v12 }
 0xd45   : > { %v2750_v54 = vpop.eup %2749  ;;  %v2237_v55 = vadd.f32 1e-05, %v2235_v29 }
 0xd46   : > { %v2239_v56 = vmul.f32 %v2750_v54, %v2236_v53  ;;  %vm2245_vm5 = vweird.f32 %v2750_v54 }
 0xd47   : > { %2751 = vrsqrt.f32 %v2237_v55  ;;  %vm2246_vm7 = vmor %vm2244_vm6, %vm2245_vm5  ;;  %vm2254_vm10 = vweird.f32 %v2237_v55 }
 0xd48   : > { %v2240_v33 = vmul.f32 %v2750_v54, %v2239_v56 }
 0xd4a   : > { %v2241_v57 = vmul.f32 0.5, %v2240_v33 }
 0xd4c   : > { %v2242_v58 = vsub.f32 1.5, %v2241_v57 }
 0xd4d   : > { %v2752_v59 = vpop.eup %2751 }
 0xd4e   : > { %v2243_v60 = vmul.f32 %v2750_v54, %v2242_v58  ;;  %v2249_v61 = vmul.f32 %v2752_v59, %v2237_v55  ;;  %vm2255_vm8 = vweird.f32 %v2752_v59 }
 0xd4f   : > { %vm2256_vm11 = vmor %vm2254_vm10, %vm2255_vm8 }
 0xd50   : > { %v2247_v63 = vsel %vm2246_vm7, %v2750_v54, %v2243_v60  ;;  %v2250_v0 = vmul.f32 %v2752_v59, %v2249_v61 }
 0xd51   : > { %v2258_v12 = vmul.f32 %v2247_v63, %v2224_v44 }
 0xd52   : > { %v2251_v3 = vmul.f32 0.5, %v2250_v0 }
 0xd53   : > { %v2263_v4 = vmul.f32 %v2747_v62, %v2258_v12 }
 0xd54   : > { %v2252_v5 = vsub.f32 1.5, %v2251_v3 }
 0xd55   : > { %v2268_v7 = vadd.f32 %v2748_v2, %v2263_v4 }
 0xd56   : > { %v2253_v8 = vmul.f32 %v2752_v59, %v2252_v5 }
 0xd57   : > { %2270 = vst.msk [vmem:[#allocation2] sm:$0xff] %vm891_vm1, %v2268_v7 }
 0xd58   : > { %v2257_v9 = vsel %vm2256_vm11, %v2752_v59, %v2253_v8 }
 0xd59   : > { %v2259_v10 = vmul.f32 %v2257_v9, %v2225_v48 }
 0xd5b   : > { %v2264_v11 = vmul.f32 %v2747_v62, %v2259_v10 }
 0xd5d   : > { %v2269_v13 = vadd.f32 %v2748_v2, %v2264_v11 }
 0xd5f   : > { %2271 = vst.msk [vmem:[#allocation2 + $0x8] sm:$0xff] %vm891_vm1, %v2269_v13 }
 0xd60 PF: > { %s3387_s24 = sld [smem:[#allocation6_spill]]  ;;  %s2810_s18 = smov [#allocation2]  }
 0xd61   : > { %s3389_s23 = sld [smem:[#allocation22_spill]]  ;;  %s2280_s28 = sshll.u32 %s2810_s18, 4  ;;  %s2281_s28 = int_to_ptr.vmem [resolvable:$true] %s2280_s28 }
 0xd62   : > { %s2811_s3 = smov 128   ;;  %s2812_s19 = smov 8  }
 0xd66   : > { %s3388_s6 = sadd.s32 4294967295, %s3387_s24  }
 0xd67   : > { %p2654_p7 = scmp.eq.s32.totalorder %s3388_s6, 1  ;;  %s2282_s1 = sshll.u32 %s3389_s23, 4  ;;  %s2283_s1 = int_to_ptr.hbm [resolvable:$true] %s2282_s1 }
 0xd69   : > { %2651 = dma.vmem_to_hbm [thread:$0]  (%p2654_p7), %s2281_s28, 256, %s2283_s1, [#allocation3], %s2811_s3, %s2811_s3, %s2812_s19  }
 0xd6a   : > { %2794 = dma.done.wait (%p2654_p7), [#allocation3], 256  }
 0xd6b   : > { %2796 = vsyncadd (%p2654_p7), [#allocation3], 4294967040 }
 0xd6c PF: > { %s3390_s8 = sld [smem:[#allocation6_spill]] }
 0xd6d   : > { %s3391_s0 = sld [smem:[#allocation5_spill]] }
 0xd6e   : > { %s3392_s30 = sld [smem:[#allocation7_spill]] }
 0xd72   : > { %s30_s20 = sadd.s32 1, %s3390_s8  }
 0xd73   : > { %p27_p8 = scmp.ge.s32.totalorder %s30_s20, 4  }
 0xd75   :  { %29 = sbr.rel (!%p27_p8) target bundleno = 17 (0x11), region = 201 }
 0xd7a   :  { %2299 = vsyncpa [#allocation3], 1 }
 0xd7b   :  { %2301 = vsyncpa [#allocation3 + $0x1], 1 }

</bundles_post_ra>
